<compile_context>
chip_gen: v7x
topology: tpu7x:2x2x1
jax: 0.10.0
libtpu: 0.0.40
codegen_flags: <defaults>
</compile_context>

<pallas_src>
import numpy as np
import jax
import jax.numpy as jnp
from jax import lax
from jax.experimental import pallas as pl
from jax.experimental.pallas import tpu as pltpu

RADIUS = 1  # box_filter = Conv2d(3,3,3, padding=r, dilation=r, groups=3, bias=False), weight == 1


# ----------------------------------------------------------------------------
# Fused kernel (one batch element per grid step):
#   box-filter stats -> conv_a MLP (+ folded BN + ReLU) -> A, b
#   -> bicubic upsample of [A; b] -> out = A_up * x_hr + b_up
# Layout: [channels, H*W] with H*W (and Hh*Wh) on lanes -> plain MXU matmuls,
# all outputs lane-dense.
# ----------------------------------------------------------------------------
def guided_filter_kernel(x_ref, y_ref, xhr_ref, kbox_ref,
                         w1_ref, s1_ref, b1_ref,
                         w2_ref, s2_ref, b2_ref, w3_ref,
                         kup_ref, out_ref):
    x = x_ref[0]                      # [3, HW]  f32
    y = y_ref[0]                      # [3, HW]  f32

    # ---- box-filter statistics: one stacked MXU pass over kbox (1/N folded in)
    ops = jnp.concatenate([x, y, x * y, x * x], axis=0).astype(jnp.bfloat16)   # [12, HW]
    means = jnp.dot(ops, kbox_ref[...], preferred_element_type=jnp.float32)    # [12, HW]
    mean_x, mean_y = means[0:3], means[3:6]
    mean_xy, mean_xx = means[6:9], means[9:12]
    cov_xy = mean_xy - mean_x * mean_y                                          # [3, HW]
    var_x = mean_xx - mean_x * mean_x                                           # [3, HW]

    # ---- conv_a: 1x1 convs (bias-free) + folded eval-mode BN + ReLU
    feat = jnp.concatenate([cov_xy, var_x], axis=0).astype(jnp.bfloat16)        # [6, HW]
    h = jnp.dot(w1_ref[...], feat, preferred_element_type=jnp.float32)          # [32, HW]
    h = jnp.maximum(h * s1_ref[...] + b1_ref[...], 0.0).astype(jnp.bfloat16)
    h = jnp.dot(w2_ref[...], h, preferred_element_type=jnp.float32)             # [32, HW]
    h = jnp.maximum(h * s2_ref[...] + b2_ref[...], 0.0).astype(jnp.bfloat16)
    A = jnp.dot(w3_ref[...], h, preferred_element_type=jnp.float32)             # [3, HW]
    b = mean_y - A * mean_x                                                      # [3, HW]

    # ---- bicubic upsample of A and b (stacked -> single dot) + combine
    ab = jnp.concatenate([A, b], axis=0).astype(jnp.bfloat16)                   # [6, HW]
    up = jnp.dot(ab, kup_ref[...], preferred_element_type=jnp.float32)          # [6, HhWh]
    out_ref[0] = up[0:3] * xhr_ref[0] + up[3:6]


# ----------------------------------------------------------------------------
# Host-side constants: band matrices for the dilated all-ones box filter and
# bicubic interpolation matrices (PyTorch semantics, a=-0.75,
# align_corners=True, index clamping at borders).
# ----------------------------------------------------------------------------
def band_matrix_np(n, r):
    i = np.arange(n)[:, None]
    j = np.arange(n)[None, :]
    d = i - j
    return ((d == 0) | (d == r) | (d == -r)).astype(np.float32)


def bicubic_matrix(out_size, in_size):
    A = -0.75

    def k1(t):  # |t| <= 1
        return ((A + 2.0) * t - (A + 3.0)) * t * t + 1.0

    def k2(t):  # 1 < |t| < 2
        return ((A * t - 5.0 * A) * t + 8.0 * A) * t - 4.0 * A

    M = np.zeros((out_size, in_size), dtype=np.float32)
    scale = (in_size - 1) / (out_size - 1) if out_size > 1 else 0.0
    for i in range(out_size):
        real = scale * i
        idx = int(np.floor(real))
        t = real - idx
        coeffs = [k2(t + 1.0), k1(t), k1(1.0 - t), k2(2.0 - t)]
        for off, c in zip((-1, 0, 1, 2), coeffs):
            j = min(max(idx + off, 0), in_size - 1)
            M[i, j] += c
    return M


# ----------------------------------------------------------------------------
# Wrapper
# ----------------------------------------------------------------------------
def conv_guided_filter(x_lr, y_lr, x_hr, params):
    w1, s1, b1, w2, s2, b2, w3 = params
    B, _, Hl, Wl = x_lr.shape
    _, _, Hh, Wh = x_hr.shape
    HW, HWh = Hl * Wl, Hh * Wh

    # ---- host-built constants (hoisted out of the kernel entirely) ----
    SH = band_matrix_np(Hl, RADIUS)
    SW = band_matrix_np(Wl, RADIUS)
    # box2d(Z) = SH @ Z @ SW  <=>  z_flat @ kron(SH, SW) on row-major planes
    # (SH, SW are symmetric).  1/N is folded into the columns of kbox.
    kbox = np.kron(SH, SW)                                                # [HW, HW]
    n_box = SH.sum(axis=1, keepdims=True) * SW.sum(axis=0, keepdims=True)  # [Hl, Wl]
    kbox_b = jnp.asarray(kbox / n_box.reshape(1, HW), jnp.bfloat16)       # [HW, HW]
    Uh = bicubic_matrix(Hh, Hl)                                           # [Hh, Hl]
    Uw = bicubic_matrix(Wh, Wl)                                           # [Wh, Wl]
    kup_b = jnp.asarray(np.kron(Uh, Uw).T, jnp.bfloat16)                  # [HW, HWh]

    # flattened (lane-dense) views; reshapes of contiguous NCHW are free.
    x_f = x_lr.reshape(B, 3, HW)
    y_f = y_lr.reshape(B, 3, HW)
    xhr_f = x_hr.reshape(B, 3, HWh)

    # explicit bf16 MXU operands (f32 accumulation happens in-kernel).
    w1b = w1.astype(jnp.bfloat16)
    w2b = w2.astype(jnp.bfloat16)
    w3b = w3.astype(jnp.bfloat16)

    def const_spec(a):
        nd = a.ndim
        return pl.BlockSpec(a.shape, lambda b, _n=nd: (0,) * _n)

    lr_spec = pl.BlockSpec((1, 3, HW), lambda b: (b, 0, 0))
    hr_spec = pl.BlockSpec((1, 3, HWh), lambda b: (b, 0, 0))

    # TODO(synk): for large B, fold batches into the matmul M dimension
    # (e.g. [B_tile*12, HW] per step) while keeping a "parallel" grid axis.
    out_f = pl.pallas_call(
        guided_filter_kernel,
        grid=(B,),
        in_specs=[lr_spec, lr_spec, hr_spec,
                  const_spec(kbox_b),
                  const_spec(w1b), const_spec(s1), const_spec(b1),
                  const_spec(w2b), const_spec(s2), const_spec(b2), const_spec(w3b),
                  const_spec(kup_b)],
        out_specs=hr_spec,
        out_shape=jax.ShapeDtypeStruct((B, 3, HWh), jnp.float32),
        compiler_params=pltpu.CompilerParams(dimension_semantics=("parallel",)),
    )(x_f, y_f, xhr_f, kbox_b, w1b, s1, b1, w2b, s2, b2, w3b, kup_b)

    return out_f.reshape(B, 3, Hh, Wh)


# ----------------------------------------------------------------------------
# Pure-JAX reference (same math, XLA ops) for a sanity check.
# ----------------------------------------------------------------------------
def reference(x_lr, y_lr, x_hr, params):
    w1, s1, b1, w2, s2, b2, w3 = params
    r = RADIUS
    kern = jnp.ones((3, 1, 2 * r + 1, 2 * r + 1), jnp.float32)

    def box(z):
        return lax.conv_general_dilated(
            z, kern, window_strides=(1, 1), padding=((r, r), (r, r)),
            rhs_dilation=(r, r), feature_group_count=3,
            dimension_numbers=("NCHW", "OIHW", "NCHW"))

    B, _, Hl, Wl = x_lr.shape
    _, _, Hh, Wh = x_hr.shape
    N = box(jnp.ones((1, 3, Hl, Wl), jnp.float32))
    mean_x = box(x_lr) / N
    mean_y = box(y_lr) / N
    cov_xy = box(x_lr * y_lr) / N - mean_x * mean_y
    var_x = box(x_lr * x_lr) / N - mean_x * mean_x
    feat = jnp.concatenate([cov_xy, var_x], axis=1)

    def conv1x1(z, w):
        return jnp.einsum("oc,bchw->bohw", w, z)

    def bn(z, s, b):
        return z * s.reshape(1, -1, 1, 1) + b.reshape(1, -1, 1, 1)

    h = jax.nn.relu(bn(conv1x1(feat, w1), s1, b1))
    h = jax.nn.relu(bn(conv1x1(h, w2), s2, b2))
    A = conv1x1(h, w3)
    b = mean_y - A * mean_x
    Uh = jnp.asarray(bicubic_matrix(Hh, Hl))
    Uw = jnp.asarray(bicubic_matrix(Wh, Wl))
    mean_A = jnp.einsum("ik,bckl,jl->bcij", Uh, A, Uw)
    mean_b = jnp.einsum("ik,bckl,jl->bcij", Uh, b, Uw)
    return mean_A * x_hr + mean_b


if __name__ == "__main__":
    B, Hl, Wl, Hh, Wh = 2, 16, 16, 32, 32

    key = jax.random.PRNGKey(0)
    ks = jax.random.split(key, 16)
    x_lr = jax.random.uniform(ks[0], (B, 3, Hl, Wl), jnp.float32)
    y_lr = jax.random.uniform(ks[1], (B, 3, Hl, Wl), jnp.float32)
    x_hr = jax.random.uniform(ks[2], (B, 3, Hh, Wh), jnp.float32)

    # conv_a weights: Conv2d(6,32,1) -> [32,6], Conv2d(32,32,1) -> [32,32],
    # Conv2d(32,3,1) -> [3,32]; all bias-free.
    w1 = 0.3 * jax.random.normal(ks[3], (32, 6), jnp.float32)
    w2 = 0.2 * jax.random.normal(ks[4], (32, 32), jnp.float32)
    w3 = 0.2 * jax.random.normal(ks[5], (3, 32), jnp.float32)

    # BatchNorm2d(32) x2 in eval mode, folded into per-channel scale/bias.
    def bn_fold(kg, kb, km, kv, n):
        gamma = 1.0 + 0.1 * jax.random.normal(kg, (n,), jnp.float32)
        beta = 0.1 * jax.random.normal(kb, (n,), jnp.float32)
        rmean = 0.1 * jax.random.normal(km, (n,), jnp.float32)
        rvar = 1.0 + 0.5 * jax.random.uniform(kv, (n,), jnp.float32)
        scale = gamma / jnp.sqrt(rvar + 1e-5)
        bias = beta - rmean * scale
        return scale.reshape(n, 1), bias.reshape(n, 1)

    s1, b1 = bn_fold(ks[6], ks[7], ks[8], ks[9], 32)
    s2, b2 = bn_fold(ks[10], ks[11], ks[12], ks[13], 32)
    params = (w1, s1, b1, w2, s2, b2, w3)

    out = conv_guided_filter(x_lr, y_lr, x_hr, params)
    out = jax.block_until_ready(out)

    ref = jax.block_until_ready(reference(x_lr, y_lr, x_hr, params))
    abs_err = float(jnp.max(jnp.abs(out - ref)))
    rel_err = abs_err / (float(jnp.max(jnp.abs(ref))) + 1e-6)
    assert out.shape == (B, 3, Hh, Wh) and np.isfinite(abs_err), "bad output"
    assert abs_err < 5e-2 and rel_err < 5e-2, \
        f"mismatch vs reference, abs={abs_err}, rel={rel_err}"
    print("KERNEL_OK")
</pallas_src>

<mosaic_0001>
module attributes {stable_mosaic.version = 11 : i64} {
  func.func @guided_filter_kernel(%arg0: i32, %arg1: memref<1x3x256xf32, #tpu.memory_space<vmem>>, %arg2: memref<1x3x256xf32, #tpu.memory_space<vmem>>, %arg3: memref<1x3x1024xf32, #tpu.memory_space<vmem>>, %arg4: memref<256x256xbf16, #tpu.memory_space<vmem>>, %arg5: memref<32x6xbf16, #tpu.memory_space<vmem>>, %arg6: memref<32x1xf32, #tpu.memory_space<vmem>>, %arg7: memref<32x1xf32, #tpu.memory_space<vmem>>, %arg8: memref<32x32xbf16, #tpu.memory_space<vmem>>, %arg9: memref<32x1xf32, #tpu.memory_space<vmem>>, %arg10: memref<32x1xf32, #tpu.memory_space<vmem>>, %arg11: memref<3x32xbf16, #tpu.memory_space<vmem>>, %arg12: memref<256x1024xbf16, #tpu.memory_space<vmem>>, %arg13: memref<1x3x1024xf32, #tpu.memory_space<vmem>>) attributes {dimension_semantics = [#tpu.dimension_semantics<parallel>], iteration_bounds = array<i64: 2>, scalar_prefetch = 0 : i64, scratch_operands = 0 : i64, tpu.core_type = #tpu.core_type<tc>, window_params = [{transform_indices = @transform_0, window_bounds = array<i64: 1, 3, 256>}, {transform_indices = @transform_1, window_bounds = array<i64: 1, 3, 256>}, {transform_indices = @transform_2, window_bounds = array<i64: 1, 3, 1024>}, {pipeline_mode = #tpu.pipeline_mode<synchronous>, transform_indices = @transform_3, window_bounds = array<i64: 256, 256>}, {pipeline_mode = #tpu.pipeline_mode<synchronous>, transform_indices = @transform_4, window_bounds = array<i64: 32, 6>}, {pipeline_mode = #tpu.pipeline_mode<synchronous>, transform_indices = @transform_5, window_bounds = array<i64: 32, 1>}, {pipeline_mode = #tpu.pipeline_mode<synchronous>, transform_indices = @transform_6, window_bounds = array<i64: 32, 1>}, {pipeline_mode = #tpu.pipeline_mode<synchronous>, transform_indices = @transform_7, window_bounds = array<i64: 32, 32>}, {pipeline_mode = #tpu.pipeline_mode<synchronous>, transform_indices = @transform_8, window_bounds = array<i64: 32, 1>}, {pipeline_mode = #tpu.pipeline_mode<synchronous>, transform_indices = @transform_9, window_bounds = array<i64: 32, 1>}, {pipeline_mode = #tpu.pipeline_mode<synchronous>, transform_indices = @transform_10, window_bounds = array<i64: 3, 32>}, {pipeline_mode = #tpu.pipeline_mode<synchronous>, transform_indices = @transform_11, window_bounds = array<i64: 256, 1024>}, {transform_indices = @transform_12, window_bounds = array<i64: 1, 3, 1024>}]} {
    %c0 = arith.constant 0 : index
    %c0_0 = arith.constant 0 : index
    %c0_1 = arith.constant 0 : index
    %0 = vector.load %arg1[%c0, %c0_0, %c0_1] : memref<1x3x256xf32, #tpu.memory_space<vmem>>, vector<1x3x256xf32>
    %1 = vector.shape_cast %0 : vector<1x3x256xf32> to vector<3x256xf32>
    %c0_2 = arith.constant 0 : index
    %c0_3 = arith.constant 0 : index
    %c0_4 = arith.constant 0 : index
    %2 = vector.load %arg2[%c0_2, %c0_3, %c0_4] : memref<1x3x256xf32, #tpu.memory_space<vmem>>, vector<1x3x256xf32>
    %3 = vector.shape_cast %2 : vector<1x3x256xf32> to vector<3x256xf32>
    %4 = arith.mulf %1, %3 : vector<3x256xf32>
    %5 = arith.mulf %1, %1 : vector<3x256xf32>
    %6 = tpu.concatenate %1, %3, %4, %5 in 0 : vector<3x256xf32>, vector<3x256xf32>, vector<3x256xf32>, vector<3x256xf32> -> vector<12x256xf32>
    %7 = arith.truncf %6 : vector<12x256xf32> to vector<12x256xbf16>
    %c0_5 = arith.constant 0 : index
    %c0_6 = arith.constant 0 : index
    %8 = vector.load %arg4[%c0_5, %c0_6] : memref<256x256xbf16, #tpu.memory_space<vmem>>, vector<256x256xbf16>
    %cst = arith.constant dense<0.000000e+00> : vector<12x256xf32>
    %9 = tpu.matmul %7, %8, %cst {dimension_numbers = #tpu.dot_dimension_numbers<[1], [0], [0], [1], [0, 0, 1, 1], [], []>} : vector<12x256xbf16>, vector<256x256xbf16>, vector<12x256xf32> -> vector<12x256xf32>
    %10 = vector.extract_strided_slice %9 {offsets = [0, 0], sizes = [3, 256], strides = [1, 1]} : vector<12x256xf32> to vector<3x256xf32>
    %11 = vector.extract_strided_slice %9 {offsets = [3, 0], sizes = [3, 256], strides = [1, 1]} : vector<12x256xf32> to vector<3x256xf32>
    %12 = vector.extract_strided_slice %9 {offsets = [6, 0], sizes = [3, 256], strides = [1, 1]} : vector<12x256xf32> to vector<3x256xf32>
    %13 = vector.extract_strided_slice %9 {offsets = [9, 0], sizes = [3, 256], strides = [1, 1]} : vector<12x256xf32> to vector<3x256xf32>
    %14 = arith.mulf %10, %11 : vector<3x256xf32>
    %15 = arith.subf %12, %14 : vector<3x256xf32>
    %16 = arith.mulf %10, %10 : vector<3x256xf32>
    %17 = arith.subf %13, %16 : vector<3x256xf32>
    %18 = tpu.concatenate %15, %17 in 0 : vector<3x256xf32>, vector<3x256xf32> -> vector<6x256xf32>
    %19 = arith.truncf %18 : vector<6x256xf32> to vector<6x256xbf16>
    %c0_7 = arith.constant 0 : index
    %c0_8 = arith.constant 0 : index
    %20 = vector.load %arg5[%c0_7, %c0_8] : memref<32x6xbf16, #tpu.memory_space<vmem>>, vector<32x6xbf16>
    %cst_9 = arith.constant dense<0.000000e+00> : vector<32x256xf32>
    %21 = tpu.matmul %20, %19, %cst_9 {dimension_numbers = #tpu.dot_dimension_numbers<[1], [0], [0], [1], [0, 0, 1, 1], [], []>} : vector<32x6xbf16>, vector<6x256xbf16>, vector<32x256xf32> -> vector<32x256xf32>
    %c0_10 = arith.constant 0 : index
    %c0_11 = arith.constant 0 : index
    %22 = vector.load %arg6[%c0_10, %c0_11] : memref<32x1xf32, #tpu.memory_space<vmem>>, vector<32x1xf32>
    %23 = vector.broadcast %22 : vector<32x1xf32> to vector<32x256xf32>
    %24 = arith.mulf %21, %23 : vector<32x256xf32>
    %c0_12 = arith.constant 0 : index
    %c0_13 = arith.constant 0 : index
    %25 = vector.load %arg7[%c0_12, %c0_13] : memref<32x1xf32, #tpu.memory_space<vmem>>, vector<32x1xf32>
    %26 = vector.broadcast %25 : vector<32x1xf32> to vector<32x256xf32>
    %27 = arith.addf %24, %26 : vector<32x256xf32>
    %cst_14 = arith.constant 0.000000e+00 : f32
    %28 = vector.broadcast %cst_14 : f32 to vector<32x256xf32>
    %29 = arith.maximumf %27, %28 : vector<32x256xf32>
    %30 = arith.truncf %29 : vector<32x256xf32> to vector<32x256xbf16>
    %c0_15 = arith.constant 0 : index
    %c0_16 = arith.constant 0 : index
    %31 = vector.load %arg8[%c0_15, %c0_16] : memref<32x32xbf16, #tpu.memory_space<vmem>>, vector<32x32xbf16>
    %cst_17 = arith.constant dense<0.000000e+00> : vector<32x256xf32>
    %32 = tpu.matmul %31, %30, %cst_17 {dimension_numbers = #tpu.dot_dimension_numbers<[1], [0], [0], [1], [0, 0, 1, 1], [], []>} : vector<32x32xbf16>, vector<32x256xbf16>, vector<32x256xf32> -> vector<32x256xf32>
    %c0_18 = arith.constant 0 : index
    %c0_19 = arith.constant 0 : index
    %33 = vector.load %arg9[%c0_18, %c0_19] : memref<32x1xf32, #tpu.memory_space<vmem>>, vector<32x1xf32>
    %34 = vector.broadcast %33 : vector<32x1xf32> to vector<32x256xf32>
    %35 = arith.mulf %32, %34 : vector<32x256xf32>
    %c0_20 = arith.constant 0 : index
    %c0_21 = arith.constant 0 : index
    %36 = vector.load %arg10[%c0_20, %c0_21] : memref<32x1xf32, #tpu.memory_space<vmem>>, vector<32x1xf32>
    %37 = vector.broadcast %36 : vector<32x1xf32> to vector<32x256xf32>
    %38 = arith.addf %35, %37 : vector<32x256xf32>
    %cst_22 = arith.constant 0.000000e+00 : f32
    %39 = vector.broadcast %cst_22 : f32 to vector<32x256xf32>
    %40 = arith.maximumf %38, %39 : vector<32x256xf32>
    %41 = arith.truncf %40 : vector<32x256xf32> to vector<32x256xbf16>
    %c0_23 = arith.constant 0 : index
    %c0_24 = arith.constant 0 : index
    %42 = vector.load %arg11[%c0_23, %c0_24] : memref<3x32xbf16, #tpu.memory_space<vmem>>, vector<3x32xbf16>
    %cst_25 = arith.constant dense<0.000000e+00> : vector<3x256xf32>
    %43 = tpu.matmul %42, %41, %cst_25 {dimension_numbers = #tpu.dot_dimension_numbers<[1], [0], [0], [1], [0, 0, 1, 1], [], []>} : vector<3x32xbf16>, vector<32x256xbf16>, vector<3x256xf32> -> vector<3x256xf32>
    %44 = arith.mulf %43, %10 : vector<3x256xf32>
    %45 = arith.subf %11, %44 : vector<3x256xf32>
    %46 = tpu.concatenate %43, %45 in 0 : vector<3x256xf32>, vector<3x256xf32> -> vector<6x256xf32>
    %47 = arith.truncf %46 : vector<6x256xf32> to vector<6x256xbf16>
    %c0_26 = arith.constant 0 : index
    %c0_27 = arith.constant 0 : index
    %48 = vector.load %arg12[%c0_26, %c0_27] : memref<256x1024xbf16, #tpu.memory_space<vmem>>, vector<256x1024xbf16>
    %cst_28 = arith.constant dense<0.000000e+00> : vector<6x1024xf32>
    %49 = tpu.matmul %47, %48, %cst_28 {dimension_numbers = #tpu.dot_dimension_numbers<[1], [0], [0], [1], [0, 0, 1, 1], [], []>} : vector<6x256xbf16>, vector<256x1024xbf16>, vector<6x1024xf32> -> vector<6x1024xf32>
    %50 = vector.extract_strided_slice %49 {offsets = [0, 0], sizes = [3, 1024], strides = [1, 1]} : vector<6x1024xf32> to vector<3x1024xf32>
    %c0_29 = arith.constant 0 : index
    %c0_30 = arith.constant 0 : index
    %c0_31 = arith.constant 0 : index
    %51 = vector.load %arg3[%c0_29, %c0_30, %c0_31] : memref<1x3x1024xf32, #tpu.memory_space<vmem>>, vector<1x3x1024xf32>
    %52 = vector.shape_cast %51 : vector<1x3x1024xf32> to vector<3x1024xf32>
    %53 = arith.mulf %50, %52 : vector<3x1024xf32>
    %54 = vector.extract_strided_slice %49 {offsets = [3, 0], sizes = [3, 1024], strides = [1, 1]} : vector<6x1024xf32> to vector<3x1024xf32>
    %55 = arith.addf %53, %54 : vector<3x1024xf32>
    %c0_32 = arith.constant 0 : index
    %c0_33 = arith.constant 0 : index
    %c0_34 = arith.constant 0 : index
    %56 = vector.load %arg13[%c0_32, %c0_33, %c0_34] : memref<1x3x1024xf32, #tpu.memory_space<vmem>>, vector<1x3x1024xf32>
    %57 = vector.shape_cast %56 : vector<1x3x1024xf32> to vector<3x1024xf32>
    %58 = vector.shape_cast %55 : vector<3x1024xf32> to vector<1x3x1024xf32>
    tpu.vector_store %arg13[%c0_32, %c0_33, %c0_34], %58 {strides = array<i32>} : memref<1x3x1024xf32, #tpu.memory_space<vmem>>, vector<1x3x1024xf32>,
    return
  }
  func.func @transform_0(%arg0: i32) -> (i32, i32, i32) {
    %c0_i32 = arith.constant 0 : i32
    %c0_i32_0 = arith.constant 0 : i32
    %c0_i32_1 = arith.constant 0 : i32
    return %arg0, %c0_i32, %c0_i32_0 : i32, i32, i32
  }
  func.func @transform_1(%arg0: i32) -> (i32, i32, i32) {
    %c0_i32 = arith.constant 0 : i32
    %c0_i32_0 = arith.constant 0 : i32
    %c0_i32_1 = arith.constant 0 : i32
    return %arg0, %c0_i32, %c0_i32_0 : i32, i32, i32
  }
  func.func @transform_2(%arg0: i32) -> (i32, i32, i32) {
    %c0_i32 = arith.constant 0 : i32
    %c0_i32_0 = arith.constant 0 : i32
    %c0_i32_1 = arith.constant 0 : i32
    return %arg0, %c0_i32, %c0_i32_0 : i32, i32, i32
  }
  func.func @transform_3(%arg0: i32) -> (i32, i32) {
    %c0_i32 = arith.constant 0 : i32
    %c0_i32_0 = arith.constant 0 : i32
    %c0_i32_1 = arith.constant 0 : i32
    return %c0_i32, %c0_i32_0 : i32, i32
  }
  func.func @transform_4(%arg0: i32) -> (i32, i32) {
    %c0_i32 = arith.constant 0 : i32
    %c0_i32_0 = arith.constant 0 : i32
    %c0_i32_1 = arith.constant 0 : i32
    return %c0_i32, %c0_i32_0 : i32, i32
  }
  func.func @transform_5(%arg0: i32) -> (i32, i32) {
    %c0_i32 = arith.constant 0 : i32
    %c0_i32_0 = arith.constant 0 : i32
    %c0_i32_1 = arith.constant 0 : i32
    return %c0_i32, %c0_i32_0 : i32, i32
  }
  func.func @transform_6(%arg0: i32) -> (i32, i32) {
    %c0_i32 = arith.constant 0 : i32
    %c0_i32_0 = arith.constant 0 : i32
    %c0_i32_1 = arith.constant 0 : i32
    return %c0_i32, %c0_i32_0 : i32, i32
  }
  func.func @transform_7(%arg0: i32) -> (i32, i32) {
    %c0_i32 = arith.constant 0 : i32
    %c0_i32_0 = arith.constant 0 : i32
    %c0_i32_1 = arith.constant 0 : i32
    return %c0_i32, %c0_i32_0 : i32, i32
  }
  func.func @transform_8(%arg0: i32) -> (i32, i32) {
    %c0_i32 = arith.constant 0 : i32
    %c0_i32_0 = arith.constant 0 : i32
    %c0_i32_1 = arith.constant 0 : i32
    return %c0_i32, %c0_i32_0 : i32, i32
  }
  func.func @transform_9(%arg0: i32) -> (i32, i32) {
    %c0_i32 = arith.constant 0 : i32
    %c0_i32_0 = arith.constant 0 : i32
    %c0_i32_1 = arith.constant 0 : i32
    return %c0_i32, %c0_i32_0 : i32, i32
  }
  func.func @transform_10(%arg0: i32) -> (i32, i32) {
    %c0_i32 = arith.constant 0 : i32
    %c0_i32_0 = arith.constant 0 : i32
    %c0_i32_1 = arith.constant 0 : i32
    return %c0_i32, %c0_i32_0 : i32, i32
  }
  func.func @transform_11(%arg0: i32) -> (i32, i32) {
    %c0_i32 = arith.constant 0 : i32
    %c0_i32_0 = arith.constant 0 : i32
    %c0_i32_1 = arith.constant 0 : i32
    return %c0_i32, %c0_i32_0 : i32, i32
  }
  func.func @transform_12(%arg0: i32) -> (i32, i32, i32) {
    %c0_i32 = arith.constant 0 : i32
    %c0_i32_0 = arith.constant 0 : i32
    %c0_i32_1 = arith.constant 0 : i32
    return %arg0, %c0_i32, %c0_i32_0 : i32, i32, i32
  }
}

</mosaic_0001>

<bundles_post_ra>
// kernel: tpu_custom_call.1
= control target key start
LH: loop header
LB: loop body
LE: loop exit
PB: predicated region body
PF: predicated region fallthrough
CT: control target
= control target key end

     0   :  { %17 = vsyncpa [#allocation3], 0  ;;  %s2638_s21 = smov 0   ;;  %s2921_s0 = inlined_call_operand.vmem [shape: f32[2,3,256], index: 0, kind: input, shape index: {}]   ;;  %s2922_s1 = inlined_call_operand.vmem [shape: f32[2,3,256], index: 1, kind: input, shape index: {}]   ;;  %s2923_s2 = inlined_call_operand.vmem [shape: f32[2,3,1024], index: 2, kind: input, shape index: {}]   ;;  %s2924_s3 = inlined_call_operand.vmem [shape: bf16[256,256], index: 3, kind: input, shape index: {}]   ;;  %s2925_s4 = inlined_call_operand.vmem [shape: bf16[32,6], index: 4, kind: input, shape index: {}]   ;;  %s2926_s5 = inlined_call_operand.vmem [shape: f32[32,1], index: 5, kind: input, shape index: {}]   ;;  %s2927_s6 = inlined_call_operand.vmem [shape: f32[32,1], index: 6, kind: input, shape index: {}]   ;;  %s2928_s7 = inlined_call_operand.vmem [shape: bf16[32,32], index: 7, kind: input, shape index: {}]   ;;  %s2929_s8 = inlined_call_operand.vmem [shape: f32[32,1], index: 8, kind: input, shape index: {}]   ;;  %s2930_s9 = inlined_call_operand.vmem [shape: f32[32,1], index: 9, kind: input, shape index: {}]   ;;  %s2931_s10 = inlined_call_operand.vmem [shape: bf16[3,32], index: 10, kind: input, shape index: {}]   ;;  %s2932_s11 = inlined_call_operand.hbm [shape: bf16[256,1024], index: 11, kind: input, shape index: {}]   ;;  %s2933_s12 = inlined_call_operand.vmem [shape: f32[2,3,1024], index: 12, kind: output, shape index: {}]  }
   0x1 LB: > { %s2644_s22 = sadd.s32 4294967295, %s2567_s21   ;;  %p2258_p0 = scmp.ge.s32.totalorder %s2567_s21, 1  ;;  %s2567_s21 = sphi %s2638_s21, %s23_s21  }
   0x2   : > { %p321_p1 = scmp.lt.s32.totalorder %s2567_s21, 3  ;;  %s2569_s23 = smov [#allocation2]  }
   0x3   : > { %s357_s24 = sshll.u32 %s2569_s23, 4  ;;  %p2934_p3 = scmp.eq.s32.totalorder %s2644_s22, 0  ;;  %s358_s24 = int_to_ptr.vmem [resolvable:$true] %s357_s24 }
   0x4   : > { %p2648_p2 = pnand %p2258_p0, %p321_p1  ;;  %s2529_s29 = scalar_lea.hbm %s2932_s11, 16384 }
   0x5   : > { %p2530_p6 = scmp.ne.s32.totalorder %s2932_s11, %s2529_s29  ;;  %p2536_p10 = scmp.lt.u32.totalorder %s2529_s29, %s2932_s11 }
   0x6   : > { %s2936_s25 = scalar_select %p2648_p2, 1, 0 }
   0x7   : > { %p2451_p4 = pneg %p2648_p2 }
   0x9   : > { %p2657_p5 = pnand %p2934_p3, %p2451_p4 }
   0xb   : > { %p2531_p7 = pneg %p2657_p5 }
   0xd   : > { %p2532_p8 = pnand %p2531_p7, %p2530_p6 }
   0xf   : > { %p2533_p9 = pneg %p2532_p8 }
  0x11   : > { %p2538_p11 = pnand %p2536_p10, %p2533_p9 }
  0x13   : > { %2541 = shalt.err (!%p2538_p11)
}
  0x14   : > { %s2542_s16 = scalar_lea.vmem %s358_s24, 16384  ;;  %p2550_p1 = scmp.lt.s32.totalorder %s358_s24, %s358_s24 }
  0x15   : > { %p2543_p12 = scmp.ne.s32.totalorder %s358_s24, %s2542_s16  ;;  %p2551_p4 = scmp.lt.s32.totalorder %s2542_s16, %s2542_s16 }
  0x17   : > { %p2545_p13 = pnand %p2543_p12, %p2531_p7  ;;  %p2552_p3 = por %p2551_p4, %p2550_p1 }
  0x19   : > { %p2546_p0 = pneg %p2545_p13 }
  0x1b   : > { %p2553_p2 = pnand %p2552_p3, %p2546_p0 }
  0x1d   : > { %2556 = shalt.err (!%p2553_p2)
}
  0x1e   : > { %s2570_s17 = smov 512   ;;  %s2571_s18 = smov 32  }
  0x1f   : > { %2454 = dma.hbm_to_vmem [thread:$0]  (!%p2657_p5), %s2932_s11, 16384, %s358_s24, [#allocation3], %s2570_s17, %s2570_s17, %s2571_s18  }
  0x20   : > { %p2938_p6 = scmp.ne.s32.totalorder %s2936_s25, 0 }
  0x21   : > { %p2939_p8 = scmp.eq.s32.totalorder (!%p2938_p6), %s2644_s22, 0 }
  0x22   : > { %397 = sbr.rel (%p2938_p6) target bundleno = 1315 (0x523), region = 68 }
  0x29   : > { %2562 = dma.done.wait (%p2939_p8), [#allocation3], 16384   ;;  %p2940_p7 = pmov %p2939_p8 }
  0x2a   : > { %v2471_v0 = vld [vmem:[%s2924_s3 + $0x4] ss:$8 sps:$4 sm:$0xff]   ;;  %v2473_v1 = vld [vmem:[%s2924_s3] ss:$8 sps:$4 sm:$0xff]   ;;  %v2474_v2 = vld [vmem:[%s2924_s3 + $0x14] ss:$8 sps:$4 sm:$0xff]  }
  0x2b   : > { %2564 = vsyncadd (%p2940_p7), [#allocation3], 4294950912  ;;  %698 = vmatprep.subr.bf16.mxu0 %v2471_v0  ;;  %v2476_v3 = vld [vmem:[%s2924_s3 + $0x10] ss:$8 sps:$4 sm:$0xff]   ;;  %v2477_v4 = vld [vmem:[%s2924_s3 + $0x24] ss:$8 sps:$4 sm:$0xff]  }
  0x2c   : > { %699 = vmatpush1.bf16.msra.mxu0 %v2473_v1  ;;  %v2479_v5 = vld [vmem:[%s2924_s3 + $0x20] ss:$8 sps:$4 sm:$0xff]   ;;  %p449_p2 = scmp.lt.s32.totalorder %s2644_s22, 1  ;;  %v2480_v6 = vld [vmem:[%s2924_s3 + $0x34] ss:$8 sps:$4 sm:$0xff]   ;;  %vm495_vm0 = vcmask 1042432  }
  0x2d   : > { %700 = vmatprep.subr.bf16.mxu0 %v2474_v2  ;;  %v2482_v7 = vld [vmem:[%s2924_s3 + $0x30] ss:$8 sps:$4 sm:$0xff]   ;;  %v2483_v8 = vld [vmem:[%s2924_s3 + $0x44] ss:$8 sps:$4 sm:$0xff]   ;;  %v2485_v9 = vld [vmem:[%s2924_s3 + $0x40] ss:$8 sps:$4 sm:$0xff]  }
  0x2e   : > { %s2942_s22 = smov (!%p449_p2, %s2644_s22), 1  ;;  %v2486_v10 = vld [vmem:[%s2924_s3 + $0x54] ss:$8 sps:$4 sm:$0xff]   ;;  %v2488_v11 = vld [vmem:[%s2924_s3 + $0x50] ss:$8 sps:$4 sm:$0xff]   ;;  %vm498_vm1 = vcmask 1045504  }
  0x2f   : > { %s2443_s24 = sshll.u32 %s2942_s22, 3  ;;  %v2489_v12 = vld [vmem:[%s2924_s3 + $0x64] ss:$8 sps:$4 sm:$0xff]   ;;  %v2491_v13 = vld [vmem:[%s2924_s3 + $0x60] ss:$8 sps:$4 sm:$0xff]   ;;  %vm501_vm2 = vcmask 1040384  }
  0x30   : > { %701 = vmatpush1.bf16.msra.mxu0 %v2476_v3  ;;  %s453_s14 = scalar_lea.vmem %s2921_s0, %s2443_s24  ;;  %s458_s17 = scalar_lea.vmem %s2922_s1, %s2443_s24  ;;  %v2492_v20 = vld [vmem:[%s2924_s3 + $0x74] ss:$8 sps:$4 sm:$0xff]   ;;  %v2494_v27 = vld [vmem:[%s2924_s3 + $0x70] ss:$8 sps:$4 sm:$0xff]   ;;  %v2495_v28 = vld [vmem:[%s2924_s3 + $0x84] ss:$8 sps:$4 sm:$0xff]  }
  0x31   : > { %702 = vmatprep.subr.bf16.mxu0 %v2477_v4  ;;  %v470_v14 = vld [vmem:[%s453_s14] sm:$0x77]  ;;  %v2498_v33 = vld [vmem:[%s2924_s3 + $0x94] ss:$8 sps:$4 sm:$0xff]   ;;  %v2500_v34 = vld [vmem:[%s2924_s3 + $0x90] ss:$8 sps:$4 sm:$0xff]  }
  0x32   : > { %v471_v15 = vld [vmem:[%s458_s17] sm:$0x77]  ;;  %v473_v17 = vmul.f32 %v470_v14, %v470_v14  ;;  %v475_v18 = vcombine.high %v470_v14, %v470_v14  ;;  %v2504_v37 = vld [vmem:[%s2924_s3 + $0xb4] ss:$8 sps:$4 sm:$0xff]   ;;  %v2506_v38 = vld [vmem:[%s2924_s3 + $0xb0] ss:$8 sps:$4 sm:$0xff]  }
  0x33   : > { %v472_v16 = vmul.f32 %v471_v15, %v470_v14  ;;  %v478_v19 = vcombine.high %v471_v15, %v471_v15  ;;  %v2497_v32 = vld [vmem:[%s2924_s3 + $0x80] ss:$8 sps:$4 sm:$0xff]   ;;  %v2501_v35 = vld [vmem:[%s2924_s3 + $0xa4] ss:$8 sps:$4 sm:$0xff]   ;;  %v2510_v41 = vld [vmem:[%s2924_s3 + $0xd4] ss:$8 sps:$4 sm:$0xff]  }
  0x34   : > { %703 = vmatpush1.bf16.msra.mxu0 %v2479_v5  ;;  %v490_v23 = vcombine.high %v473_v17, %v473_v17  ;;  %v2503_v36 = vld [vmem:[%s2924_s3 + $0xa0] ss:$8 sps:$4 sm:$0xff]   ;;  %v2507_v39 = vld [vmem:[%s2924_s3 + $0xc4] ss:$8 sps:$4 sm:$0xff]   ;;  %v2512_v42 = vld [vmem:[%s2924_s3 + $0xd0] ss:$8 sps:$4 sm:$0xff]  }
  0x35   : > { %704 = vmatprep.subr.bf16.mxu0 %v2480_v6  ;;  %v480_v21 = vrot.slane %v478_v19, 5  ;;  %v484_v22 = vcombine.high %v472_v16, %v472_v16  ;;  %v2509_v40 = vld [vmem:[%s2924_s3 + $0xc0] ss:$8 sps:$4 sm:$0xff]   ;;  %v2513_v43 = vld [vmem:[%s2924_s3 + $0xe4] ss:$8 sps:$4 sm:$0xff]   ;;  %v479_v44 = vrot.slane %v471_v15, 5 }
  0x36   : > { %v492_v25 = vrot.slane %v490_v23, 7  ;;  %v2515_v45 = vld [vmem:[%s2924_s3 + $0xe0] ss:$8 sps:$4 sm:$0xff]   ;;  %v485_v46 = vrot.slane %v472_v16, 2  ;;  %v491_v47 = vrot.slane %v473_v17, 7  ;;  %v2572_v54 = vmov 0  }
  0x37   : > { %v486_v24 = vrot.slane %v484_v22, 2  ;;  %v497_v26 = vsel %vm495_vm0, %v475_v18, %v480_v21  ;;  %v2516_v48 = vld [vmem:[%s2924_s3 + $0xf4] ss:$8 sps:$4 sm:$0xff]   ;;  %v496_v49 = vsel %vm495_vm0, %v470_v14, %v479_v44  ;;  %v2518_v50 = vld [vmem:[%s2924_s3 + $0xf0] ss:$8 sps:$4 sm:$0xff]   ;;  %851 = vmatprep.mubr.bf16.mxu1 %v2572_v54  ;;  %2469 = vset.pattern.permute.xlu0 %v2572_v54  ;;  %v872_v55 = vld [vmem:[%s2926_s5] sm:$0xff] }
  0x38   : > { %705 = vmatpush1.bf16.msra.mxu0 %v2482_v7  ;;  %v499_v51 = vsel %vm498_vm1, %v496_v49, %v485_v46  ;;  %v502_v52 = vsel %vm501_vm2, %v485_v46, %v491_v47  ;;  %2470 = vset.pattern.permute.xlu1 %v2572_v54  ;;  %v904_v56 = vld [vmem:[%s2927_s6] sm:$0xff]  ;;  %v873_v57 = vld [vmem:[%s2926_s5 + $0x8] sm:$0xff]  ;;  %v874_v59 = vld [vmem:[%s2926_s5 + $0x10] sm:$0xff]  ;;  %vm773_vm3 = vcmask 1041408   ;;  %vm806_vm4 = vcmask 48128   ;;  %s2445_s27 = sshll.u32 %s2942_s22, 5 }
  0x39   : > { %706 = vmatprep.subr.bf16.mxu0 %v2483_v8  ;;  %v500_v29 = vsel %vm498_vm1, %v497_v26, %v486_v24  ;;  %v503_v30 = vsel %vm501_vm2, %v486_v24, %v492_v25  ;;  %v504_v53 = vpack.c.bf16 %v502_v52, %v499_v51  ;;  %878 = vperm.xlu0 %2469, %v872_v55   ;;  %v905_v58 = vld [vmem:[%s2927_s6 + $0x8] sm:$0xff]  ;;  %v875_v60 = vld [vmem:[%s2926_s5 + $0x18] sm:$0xff]  ;;  %v906_v61 = vld [vmem:[%s2927_s6 + $0x10] sm:$0xff]  ;;  %vm962_vm5 = vcmask 261120   ;;  %s2903_s24 = scalar_lea.vmem %s2923_s2, %s2445_s27  ;;  %s2910_s29 = scalar_lea.vmem %s2933_s12, %s2445_s27 }
  0x3a   : > { %v505_v31 = vpack.c.bf16 %v503_v30, %v500_v29  ;;  %910 = vperm.xlu1 %2470, %v904_v56   ;;  %v907_v62 = vld [vmem:[%s2927_s6 + $0x18] sm:$0xff]  ;;  %v1022_v63 = vld [vmem:[%s2929_s8] sm:$0xff]  ;;  %v1023_v0 = vld [vmem:[%s2929_s8 + $0x8] sm:$0xff] }
  0x3b   : > { %v1054_v1 = vld [vmem:[%s2930_s9] sm:$0xff]  ;;  %v1055_v2 = vld [vmem:[%s2930_s9 + $0x8] sm:$0xff]  ;;  %v1024_v3 = vld [vmem:[%s2929_s8 + $0x10] sm:$0xff] }
  0x3c   : > { %707 = vmatpush1.bf16.msra.mxu0 %v2485_v9  ;;  %730 = vmatprep.mubr.bf16.mxu0 %v505_v31  ;;  %v1025_v4 = vld [vmem:[%s2929_s8 + $0x18] sm:$0xff]  ;;  %v1056_v5 = vld [vmem:[%s2930_s9 + $0x10] sm:$0xff] }
  0x3d   : > { %708 = vmatprep.subr.bf16.mxu0 %v2486_v10  ;;  %883 = vperm.xlu0 %2469, %v873_v57   ;;  %v1057_v6 = vld [vmem:[%s2930_s9 + $0x18] sm:$0xff] }
  0x3e   : > { %915 = vperm.xlu1 %2470, %v905_v58  }
  0x40   : > { %709 = vmatpush1.bf16.msra.mxu0 %v2488_v11 }
  0x41   : > { %710 = vmatprep.subr.bf16.mxu0 %v2489_v12  ;;  %888 = vperm.xlu0 %2469, %v874_v59  }
  0x42   : > { %893 = vperm.xlu1 %2470, %v875_v60  }
  0x44   : > { %711 = vmatpush1.bf16.msra.mxu0 %v2491_v13 }
  0x45   : > { %712 = vmatprep.subr.bf16.mxu0 %v2492_v20  ;;  %920 = vperm.xlu0 %2469, %v906_v61  }
  0x46   : > { %925 = vperm.xlu1 %2470, %v907_v62  }
  0x48   : > { %713 = vmatpush1.bf16.msra.mxu0 %v2494_v27 }
  0x49   : > { %714 = vmatprep.subr.bf16.mxu0 %v2495_v28  ;;  %1028 = vperm.xlu0 %2469, %v1022_v63  }
  0x4a   : > { %1033 = vperm.xlu1 %2470, %v1023_v0  }
  0x4c   : > { %715 = vmatpush1.bf16.msra.mxu0 %v2497_v32 }
  0x4d   : > { %716 = vmatprep.subr.bf16.mxu0 %v2498_v33  ;;  %1060 = vperm.xlu0 %2469, %v1054_v1  }
  0x4e   : > { %1065 = vperm.xlu1 %2470, %v1055_v2  }
  0x50   : > { %717 = vmatpush1.bf16.msra.mxu0 %v2500_v34 }
  0x51   : > { %718 = vmatprep.subr.bf16.mxu0 %v2501_v35  ;;  %1038 = vperm.xlu0 %2469, %v1024_v3  }
  0x52   : > { %1043 = vperm.xlu1 %2470, %v1025_v4  }
  0x54   : > { %719 = vmatpush1.bf16.msra.mxu0 %v2503_v36 }
  0x55   : > { %720 = vmatprep.subr.bf16.mxu0 %v2504_v37  ;;  %1070 = vperm.xlu0 %2469, %v1056_v5  }
  0x56   : > { %1075 = vperm.xlu1 %2470, %v1057_v6  }
  0x58   : > { %721 = vmatpush1.bf16.msra.mxu0 %v2506_v38 }
  0x59   : > { %722 = vmatprep.subr.bf16.mxu0 %v2507_v39 }
  0x5c   : > { %723 = vmatpush1.bf16.msra.mxu0 %v2509_v40  ;;  %v2521_v40 = vld [vmem:[%s2925_s4] sm:$0xff]  }
  0x5d   : > { %724 = vmatprep.subr.bf16.mxu0 %v2510_v41  ;;  %v2522_v41 = vld [vmem:[%s2925_s4 + $0x8] sm:$0xff]  }
  0x60   : > { %725 = vmatpush1.bf16.msra.mxu0 %v2512_v42 }
  0x61   : > { %726 = vmatprep.subr.bf16.mxu0 %v2513_v43 }
  0x64   : > { %727 = vmatpush1.bf16.msra.mxu0 %v2515_v45 }
  0x65   : > { %728 = vmatprep.subr.bf16.mxu0 %v2516_v48 }
  0x68   : > { %729 = vmatpush1.bf16.msra.mxu0 %v2518_v50 }
  0x6b   : > { %731 = vmatmul.mubr.bf16.vlgmr.msra.gmra.mrb[0].mxu0 %v504_v53 }
  0xb8   : > { %v879_v42 = vpop.permute.xlu0 %878 }
  0xb9   : > { %v911_v43 = vpop.permute.xlu1 %910 }
  0xbc   : > { %v884_v44 = vpop.permute.xlu0 %883 }
  0xbd   : > { %v916_v45 = vpop.permute.xlu1 %915 }
  0xc0   : > { %v889_v55 = vpop.permute.xlu0 %888 }
  0xc1   : > { %v894_v59 = vpop.permute.xlu1 %893 }
  0xc4   : > { %v921_v5 = vpop.permute.xlu0 %920 }
 0x13e   : > { %v2847_v7 = vpop.f32.mrb[0].mxu0 }
 0x13f   : > { %v2849_v8 = vpop.f32.mrb[1].mxu0  ;;  %v743_v9 = vrot.slane %v2847_v7, 3  ;;  %v759_v10 = vmul.f32 %v2847_v7, %v2847_v7 }
 0x140   : > { %v736_v11 = vpop.f32.mrb[2].mxu0  ;;  %v744_v12 = vrot.slane %v2849_v8, 3  ;;  %v760_v13 = vmul.f32 %v2849_v8, %v2849_v8 }
 0x141   : > { %v747_v14 = vmul.f32 %v743_v9, %v2847_v7  ;;  %v763_v15 = vrot.slane %v759_v10, 7  ;;  %v738_v16 = vpop.f32.mrb[3].mxu0 }
 0x142   : > { %v748_v17 = vmul.f32 %v744_v12, %v2849_v8  ;;  %v764_v18 = vrot.slane %v760_v13, 7 }
 0x143   : > { %v751_v19 = vrot.slane %v747_v14, 2  ;;  %v767_v20 = vsub.f32 %v736_v11, %v763_v15  ;;  %v926_v14 = vpop.permute.xlu1 %925 }
 0x144   : > { %v752_v21 = vrot.slane %v748_v17, 2  ;;  %v768_v22 = vsub.f32 %v738_v16, %v764_v18 }
 0x145   : > { %v755_v23 = vsub.f32 %v2847_v7, %v751_v19  ;;  %v757_v24 = vsub.f32 %v736_v11, %v751_v19  ;;  %v784_v29 = vrot.slane %v767_v20, 6 }
 0x146   : > { %v756_v25 = vsub.f32 %v2849_v8, %v752_v21  ;;  %v758_v26 = vsub.f32 %v738_v16, %v752_v21  ;;  %v785_v32 = vrot.slane %v768_v22, 6 }
 0x147   : > { %v774_v27 = vrot.slane %v755_v23, 6  ;;  %v775_v28 = vrot.slane %v757_v24, 6 }
 0x148   : > { %v777_v30 = vrot.slane %v756_v25, 6  ;;  %v778_v31 = vrot.slane %v758_v26, 6  ;;  %v2523_v25 = vld [vmem:[%s2928_s7] sm:$0xff]   ;;  %v2524_v26 = vld [vmem:[%s2928_s7 + $0x8] sm:$0xff]  }
 0x149   : > { %v776_v33 = vsel %vm773_vm3, %v774_v27, %v775_v28  ;;  %v1158_v27 = vld [vmem:[#allocation2 + $0x8] sm:$0xff] }
 0x14a   : > { %v779_v34 = vsel %vm773_vm3, %v777_v30, %v778_v31  ;;  %v788_v35 = vsel %vm495_vm0, %v776_v33, %v784_v29  ;;  %v1162_v28 = vld [vmem:[#allocation2 + $0x28] sm:$0xff] }
 0x14b   : > { %v789_v36 = vsel %vm495_vm0, %v779_v34, %v785_v32  ;;  %v790_v37 = vpack.c.bf16 %v788_v35, %v788_v35  ;;  %v2315_v29 = vcombine.low %v1158_v27, %v1162_v28  ;;  %v2316_v30 = vcombine.high %v1158_v27, %v1162_v28  ;;  %v1166_v31 = vld [vmem:[#allocation2 + $0x48] sm:$0xff] }
 0x14c   : > { %v791_v38 = vpack.c.bf16 %v789_v36, %v789_v36  ;;  %v1170_v32 = vld [vmem:[#allocation2 + $0x68] sm:$0xff] }
 0x14d   : > { %v814_v39 = vsel %vm495_vm0, %v790_v37, 0  ;;  %v2324_v33 = vcombine.high %v1166_v31, %v1170_v32  ;;  %1966 = vmatprep.subr.bf16.mxu0 %v2316_v30  ;;  %v2323_v34 = vcombine.low %v1166_v31, %v1170_v32  ;;  %v1174_v35 = vld [vmem:[#allocation2 + $0x88] sm:$0xff] }
 0x14e   : > { %2305 = vmatprep.subr.msk.bf16.mxu1 %vm495_vm0, %v791_v38  ;;  %1967 = vmatpush1.bf16.msra.mxu0 %v2315_v29  ;;  %v1178_v36 = vld [vmem:[#allocation2 + $0xa8] sm:$0xff] }
 0x14f   : > { %820 = vmatpush1.bf16.msra.mxu1 %v814_v39  ;;  %1968 = vmatprep.subr.bf16.mxu0 %v2324_v33  ;;  %v2332_v37 = vcombine.high %v1174_v35, %v1178_v36  ;;  %v2331_v38 = vcombine.low %v1174_v35, %v1178_v36  ;;  %v1182_v39 = vld [vmem:[#allocation2 + $0xc8] sm:$0xff] }
 0x152   : > { %2306 = vmatmul.mubr.msk.bf16.vlgmr.msra.gmra.mrb[0].mxu1 %vm806_vm4, %v2521_v40  ;;  %1969 = vmatpush1.bf16.msra.mxu0 %v2323_v34  ;;  %v1186_v40 = vld [vmem:[#allocation2 + $0xe8] sm:$0xff] }
 0x153   : > { %861 = vmatprep.mubr.bf16.mxu1 %v2572_v54  ;;  %1970 = vmatprep.subr.bf16.mxu0 %v2332_v37 }
 0x156   : > { %1971 = vmatpush1.bf16.msra.mxu0 %v2331_v38 }
 0x15a   : > { %2307 = vmatmul.mubr.msk.bf16.gmra.mrb[4].mxu1 %vm806_vm4, %v2522_v41  ;;  %v2339_v41 = vcombine.low %v1182_v39, %v1186_v40 }
 0x15b   : > { %1001 = vmatprep.mubr.bf16.mxu1 %v2572_v54 }
 0x225   : > { %v853_v46 = vpop.f32.mrb[0].mxu1 }
 0x226   : > { %v896_v47 = vmul.f32 %v879_v42, %v853_v46  ;;  %v855_v48 = vpop.f32.mrb[1].mxu1  ;;  %v1198_v46 = vld [vmem:[#allocation2 + $0x148] sm:$0xff] }
 0x227   : > { %v897_v49 = vmul.f32 %v879_v42, %v855_v48  ;;  %v857_v50 = vpop.f32.mrb[2].mxu1  ;;  %v1190_v42 = vld [vmem:[#allocation2 + $0x108] sm:$0xff] }
 0x228   : > { %v928_v51 = vadd.f32 %v911_v43, %v896_v47  ;;  %v898_v52 = vmul.f32 %v884_v44, %v857_v50  ;;  %v859_v53 = vpop.f32.mrb[3].mxu1  ;;  %v1202_v47 = vld [vmem:[#allocation2 + $0x168] sm:$0xff] }
 0x229   : > { %v929_v56 = vadd.f32 %v911_v43, %v897_v49  ;;  %v899_v57 = vmul.f32 %v884_v44, %v859_v53  ;;  %v1194_v43 = vld [vmem:[#allocation2 + $0x128] sm:$0xff]  ;;  %v2356_v48 = vcombine.high %v1198_v46, %v1202_v47  ;;  %v2355_v49 = vcombine.low %v1198_v46, %v1202_v47 }
 0x22a   : > { %v930_v58 = vadd.f32 %v916_v45, %v898_v52  ;;  %v936_v61 = vmax.f32 %v928_v51, 0.0  ;;  %v2348_v44 = vcombine.high %v1190_v42, %v1194_v43  ;;  %v1206_v50 = vld [vmem:[#allocation2 + $0x188] sm:$0xff] }
 0x22b   : > { %v931_v60 = vadd.f32 %v916_v45, %v899_v57  ;;  %v937_v63 = vmax.f32 %v929_v56, 0.0  ;;  %v2347_v45 = vcombine.low %v1190_v42, %v1194_v43  ;;  %v1210_v51 = vld [vmem:[#allocation2 + $0x1a8] sm:$0xff] }
 0x22c   : > { %v938_v62 = vmax.f32 %v930_v58, 0.0  ;;  %v2364_v52 = vcombine.high %v1206_v50, %v1210_v51  ;;  %v2363_v53 = vcombine.low %v1206_v50, %v1210_v51  ;;  %v1218_v56 = vld [vmem:[#allocation2 + $0x1e8] sm:$0xff] }
 0x22d   : > { %v939_v0 = vmax.f32 %v931_v60, 0.0  ;;  %v863_v1 = vpop.f32.mrb[4].mxu1  ;;  %v1226_v60 = vld [vmem:[#allocation2 + $0x228] sm:$0xff] }
 0x22e   : > { %v944_v2 = vpack.c.bf16 %v938_v62, %v936_v61  ;;  %v900_v3 = vmul.f32 %v889_v55, %v863_v1  ;;  %v865_v4 = vpop.f32.mrb[5].mxu1 }
 0x22f   : > { %v901_v6 = vmul.f32 %v889_v55, %v865_v4  ;;  %v867_v9 = vpop.f32.mrb[6].mxu1  ;;  %v945_v10 = vpack.c.bf16 %v939_v0, %v937_v63  ;;  %v1214_v55 = vld [vmem:[#allocation2 + $0x1c8] sm:$0xff] }
 0x230   : > { %v932_v11 = vadd.f32 %v921_v5, %v900_v3  ;;  %v902_v12 = vmul.f32 %v894_v59, %v867_v9  ;;  %v869_v13 = vpop.f32.mrb[7].mxu1  ;;  %v2372_v57 = vcombine.high %v1214_v55, %v1218_v56  ;;  %v2371_v58 = vcombine.low %v1214_v55, %v1218_v56  ;;  %v1230_v63 = vld [vmem:[#allocation2 + $0x248] sm:$0xff] }
 0x231   : > { %v933_v15 = vadd.f32 %v921_v5, %v901_v6  ;;  %v903_v16 = vmul.f32 %v894_v59, %v869_v13  ;;  %969 = vmatprep.subr.bf16.mxu1 %v945_v10  ;;  %v1222_v59 = vld [vmem:[#allocation2 + $0x208] sm:$0xff] }
 0x232   : > { %v934_v17 = vadd.f32 %v926_v14, %v902_v12  ;;  %970 = vmatpush1.bf16.msra.mxu1 %v944_v2  ;;  %v940_v19 = vmax.f32 %v932_v11, 0.0  ;;  %v2380_v61 = vcombine.high %v1222_v59, %v1226_v60  ;;  %v2379_v62 = vcombine.low %v1222_v59, %v1226_v60  ;;  %v1234_v0 = vld [vmem:[#allocation2 + $0x268] sm:$0xff] }
 0x233   : > { %v935_v18 = vadd.f32 %v926_v14, %v903_v16  ;;  %v941_v21 = vmax.f32 %v933_v15, 0.0  ;;  %v2388_v1 = vcombine.high %v1230_v63, %v1234_v0  ;;  %v2387_v2 = vcombine.low %v1230_v63, %v1234_v0  ;;  %v1238_v3 = vld [vmem:[#allocation2 + $0x288] sm:$0xff] }
 0x234   : > { %v942_v20 = vmax.f32 %v934_v17, 0.0  ;;  %v1242_v4 = vld [vmem:[#allocation2 + $0x2a8] sm:$0xff] }
 0x235   : > { %v943_v22 = vmax.f32 %v935_v18, 0.0  ;;  %v2396_v5 = vcombine.high %v1238_v3, %v1242_v4  ;;  %v2395_v6 = vcombine.low %v1238_v3, %v1242_v4  ;;  %v1246_v9 = vld [vmem:[#allocation2 + $0x2c8] sm:$0xff]  ;;  %v1165_v4 = vld [vmem:[#allocation2 + $0x40] sm:$0xff] }
 0x236   : > { %v946_v23 = vpack.c.bf16 %v942_v20, %v940_v19  ;;  %v1250_v10 = vld [vmem:[#allocation2 + $0x2e8] sm:$0xff] }
 0x237   : > { %v947_v24 = vpack.c.bf16 %v943_v22, %v941_v21  ;;  %v2404_v11 = vcombine.high %v1246_v9, %v1250_v10  ;;  %v2403_v12 = vcombine.low %v1246_v9, %v1250_v10  ;;  %v1254_v13 = vld [vmem:[#allocation2 + $0x308] sm:$0xff]  ;;  %v1029_v21 = vpop.permute.xlu0 %1028  ;;  %v1034_v22 = vpop.permute.xlu1 %1033 }
 0x238   : > { %v1258_v14 = vld [vmem:[#allocation2 + $0x328] sm:$0xff] }
 0x239   : > { %971 = vmatprep.subr.bf16.mxu1 %v947_v24  ;;  %v2412_v15 = vcombine.high %v1254_v13, %v1258_v14  ;;  %v2411_v16 = vcombine.low %v1254_v13, %v1258_v14  ;;  %v1262_v17 = vld [vmem:[#allocation2 + $0x348] sm:$0xff] }
 0x23a   : > { %972 = vmatpush1.bf16.msra.mxu1 %v946_v23  ;;  %v1266_v18 = vld [vmem:[#allocation2 + $0x368] sm:$0xff] }
 0x23b   : > { %v2420_v19 = vcombine.high %v1262_v17, %v1266_v18  ;;  %v2419_v20 = vcombine.low %v1262_v17, %v1266_v18  ;;  %v1061_v23 = vpop.permute.xlu0 %1060  ;;  %v1066_v24 = vpop.permute.xlu1 %1065 }
 0x23d   : > { %2310 = vmatmul.mubr.msk.bf16.vlgmr.msra.gmra.mrb[8].mxu1 %vm962_vm5, %v2523_v25 }
 0x23e   : > { %1011 = vmatprep.mubr.bf16.mxu1 %v2572_v54 }
 0x23f   : > { %v1039_v33 = vpop.permute.xlu0 %1038  ;;  %v1044_v37 = vpop.permute.xlu1 %1043 }
 0x243   : > { %v1071_v46 = vpop.permute.xlu0 %1070 }
 0x245   : > { %2311 = vmatmul.mubr.msk.bf16.gmra.mrb[12].mxu1 %vm962_vm5, %v2524_v26 }
 0x246   : > { %1134 = vmatprep.mubr.bf16.mxu1 %v2572_v54  ;;  %v2340_v54 = vcombine.high %v1182_v39, %v1186_v40 }
 0x248   : > { %1972 = vmatprep.subr.bf16.mxu0 %v2340_v54 }
 0x249   : > { %1973 = vmatpush1.bf16.msra.mxu0 %v2339_v41 }
 0x24a   : > { %1974 = vmatprep.subr.bf16.mxu0 %v2348_v44 }
 0x24d   : > { %1975 = vmatpush1.bf16.msra.mxu0 %v2347_v45 }
 0x24e   : > { %1976 = vmatprep.subr.bf16.mxu0 %v2356_v48 }
 0x251   : > { %1977 = vmatpush1.bf16.msra.mxu0 %v2355_v49 }
 0x252   : > { %1978 = vmatprep.subr.bf16.mxu0 %v2364_v52 }
 0x255   : > { %1979 = vmatpush1.bf16.msra.mxu0 %v2363_v53  ;;  %v1076_v53 = vpop.permute.xlu1 %1075 }
 0x256   : > { %1980 = vmatprep.subr.bf16.mxu0 %v2372_v57 }
 0x259   : > { %1981 = vmatpush1.bf16.msra.mxu0 %v2371_v58 }
 0x25a   : > { %1982 = vmatprep.subr.bf16.mxu0 %v2380_v61  ;;  %v1157_v61 = vld [vmem:[#allocation2] sm:$0xff] }
 0x25d   : > { %1983 = vmatpush1.bf16.msra.mxu0 %v2379_v62  ;;  %v1161_v62 = vld [vmem:[#allocation2 + $0x20] sm:$0xff] }
 0x25e   : > { %1984 = vmatprep.subr.bf16.mxu0 %v2388_v1  ;;  %v2314_v3 = vcombine.high %v1157_v61, %v1161_v62  ;;  %v2313_v9 = vcombine.low %v1157_v61, %v1161_v62  ;;  %v1273_v61 = vld [vmem:[#allocation2 + $0x3a0] sm:$0xff]  ;;  %v1270_v62 = vld [vmem:[#allocation2 + $0x388] sm:$0xff] }
 0x261   : > { %1985 = vmatpush1.bf16.msra.mxu0 %v2387_v2 }
 0x262   : > { %1986 = vmatprep.subr.bf16.mxu0 %v2396_v5  ;;  %v1169_v5 = vld [vmem:[#allocation2 + $0x60] sm:$0xff] }
 0x263   : > { %v2322_v10 = vcombine.high %v1165_v4, %v1169_v5  ;;  %v2321_v13 = vcombine.low %v1165_v4, %v1169_v5  ;;  %v1277_v4 = vld [vmem:[#allocation2 + $0x3c0] sm:$0xff] }
 0x264   : > { %v1281_v5 = vld [vmem:[#allocation2 + $0x3e0] sm:$0xff] }
 0x265   : > { %1987 = vmatpush1.bf16.msra.mxu0 %v2395_v6  ;;  %v1098_v6 = vld [vmem:[%s2931_s10] sm:$0x3] }
 0x266   : > { %1988 = vmatprep.subr.bf16.mxu0 %v2404_v11  ;;  %v1173_v11 = vld [vmem:[#allocation2 + $0x80] sm:$0xff] }
 0x269   : > { %1989 = vmatpush1.bf16.msra.mxu0 %v2403_v12  ;;  %v1177_v12 = vld [vmem:[#allocation2 + $0xa0] sm:$0xff] }
 0x26a   : > { %1990 = vmatprep.subr.bf16.mxu0 %v2412_v15  ;;  %v2330_v14 = vcombine.high %v1173_v11, %v1177_v12  ;;  %v1181_v15 = vld [vmem:[#allocation2 + $0xc0] sm:$0xff]  ;;  %v2329_v17 = vcombine.low %v1173_v11, %v1177_v12  ;;  %v2433_v11 = vcombine.low %v1277_v4, %v1281_v5 }
 0x26d   : > { %1991 = vmatpush1.bf16.msra.mxu0 %v2411_v16  ;;  %v1185_v16 = vld [vmem:[#allocation2 + $0xe0] sm:$0xff] }
 0x26e   : > { %1992 = vmatprep.subr.bf16.mxu0 %v2420_v19  ;;  %v2338_v18 = vcombine.high %v1181_v15, %v1185_v16  ;;  %v1189_v19 = vld [vmem:[#allocation2 + $0x100] sm:$0xff] }
 0x271   : > { %1993 = vmatpush1.bf16.msra.mxu0 %v2419_v20  ;;  %v1193_v20 = vld [vmem:[#allocation2 + $0x120] sm:$0xff] }
 0x310   : > { %v1003_v25 = vpop.f32.mrb[8].mxu1 }
 0x311   : > { %v1046_v26 = vmul.f32 %v1029_v21, %v1003_v25  ;;  %v1005_v27 = vpop.f32.mrb[9].mxu1  ;;  %v2345_v25 = vcombine.low %v1189_v19, %v1193_v20 }
 0x312   : > { %v1047_v28 = vmul.f32 %v1029_v21, %v1005_v27  ;;  %v1007_v29 = vpop.f32.mrb[10].mxu1  ;;  %v2337_v21 = vcombine.low %v1181_v15, %v1185_v16  ;;  %v1205_v27 = vld [vmem:[#allocation2 + $0x180] sm:$0xff]  ;;  %v1163_v15 = vld [vmem:[#allocation2 + $0x30] sm:$0xff]  ;;  %v1160_v16 = vld [vmem:[#allocation2 + $0x18] sm:$0xff] }
 0x313   : > { %v1078_v30 = vadd.f32 %v1061_v23, %v1046_v26  ;;  %v1048_v31 = vmul.f32 %v1034_v22, %v1007_v29  ;;  %v1009_v32 = vpop.f32.mrb[11].mxu1 }
 0x314   : > { %v1079_v34 = vadd.f32 %v1061_v23, %v1047_v28  ;;  %v1049_v35 = vmul.f32 %v1034_v22, %v1009_v32  ;;  %v2346_v22 = vcombine.high %v1189_v19, %v1193_v20  ;;  %v1197_v23 = vld [vmem:[#allocation2 + $0x140] sm:$0xff] }
 0x315   : > { %v1080_v36 = vadd.f32 %v1066_v24, %v1048_v31  ;;  %v1086_v39 = vmax.f32 %v1078_v30, 0.0  ;;  %v1209_v28 = vld [vmem:[#allocation2 + $0x1a0] sm:$0xff] }
 0x316   : > { %v1081_v38 = vadd.f32 %v1066_v24, %v1049_v35  ;;  %v1087_v54 = vmax.f32 %v1079_v34, 0.0  ;;  %v1201_v24 = vld [vmem:[#allocation2 + $0x160] sm:$0xff]  ;;  %v2362_v30 = vcombine.high %v1205_v27, %v1209_v28 }
 0x317   : > { %v1088_v40 = vmax.f32 %v1080_v36, 0.0  ;;  %v2354_v26 = vcombine.high %v1197_v23, %v1201_v24  ;;  %v2353_v29 = vcombine.low %v1197_v23, %v1201_v24  ;;  %v1213_v31 = vld [vmem:[#allocation2 + $0x1c0] sm:$0xff] }
 0x318   : > { %v1089_v41 = vmax.f32 %v1081_v38, 0.0  ;;  %v1013_v42 = vpop.f32.mrb[12].mxu1  ;;  %v1217_v32 = vld [vmem:[#allocation2 + $0x1e0] sm:$0xff] }
 0x319   : > { %v1094_v43 = vpack.c.bf16 %v1088_v40, %v1086_v39  ;;  %v1050_v44 = vmul.f32 %v1039_v33, %v1013_v42  ;;  %v1015_v45 = vpop.f32.mrb[13].mxu1  ;;  %v2370_v34 = vcombine.high %v1213_v31, %v1217_v32  ;;  %v1221_v35 = vld [vmem:[#allocation2 + $0x200] sm:$0xff] }
 0x31a   : > { %v1051_v47 = vmul.f32 %v1039_v33, %v1015_v45  ;;  %v1017_v48 = vpop.f32.mrb[14].mxu1  ;;  %v1095_v49 = vpack.c.bf16 %v1089_v41, %v1087_v54  ;;  %v2361_v33 = vcombine.low %v1205_v27, %v1209_v28  ;;  %v1225_v36 = vld [vmem:[#allocation2 + $0x220] sm:$0xff] }
 0x31b   : > { %v1082_v50 = vadd.f32 %v1071_v46, %v1050_v44  ;;  %v1052_v51 = vmul.f32 %v1044_v37, %v1017_v48  ;;  %v1019_v52 = vpop.f32.mrb[15].mxu1  ;;  %v2378_v38 = vcombine.high %v1221_v35, %v1225_v36  ;;  %v1229_v39 = vld [vmem:[#allocation2 + $0x240] sm:$0xff]  ;;  %v2377_v54 = vcombine.low %v1221_v35, %v1225_v36  ;;  %v1171_v35 = vld [vmem:[#allocation2 + $0x70] sm:$0xff]  ;;  %v1168_v36 = vld [vmem:[#allocation2 + $0x58] sm:$0xff] }
 0x31c   : > { %v1083_v55 = vadd.f32 %v1071_v46, %v1051_v47  ;;  %v1053_v56 = vmul.f32 %v1044_v37, %v1019_v52  ;;  %1102 = vmatprep.subr.bf16.mxu1 %v1095_v49  ;;  %v2369_v37 = vcombine.low %v1213_v31, %v1217_v32  ;;  %v1233_v40 = vld [vmem:[#allocation2 + $0x260] sm:$0xff] }
 0x31d   : > { %v1084_v57 = vadd.f32 %v1076_v53, %v1052_v51  ;;  %1103 = vmatpush1.bf16.msra.mxu1 %v1094_v43  ;;  %v1090_v59 = vmax.f32 %v1082_v50, 0.0  ;;  %v2386_v41 = vcombine.high %v1229_v39, %v1233_v40  ;;  %v1237_v42 = vld [vmem:[#allocation2 + $0x280] sm:$0xff]  ;;  %v2385_v44 = vcombine.low %v1229_v39, %v1233_v40  ;;  %v1175_v40 = vld [vmem:[#allocation2 + $0x90] sm:$0xff] }
 0x31e   : > { %v1085_v58 = vadd.f32 %v1076_v53, %v1053_v56  ;;  %v1091_v63 = vmax.f32 %v1083_v55, 0.0  ;;  %v1241_v43 = vld [vmem:[#allocation2 + $0x2a0] sm:$0xff] }
 0x31f   : > { %v1092_v60 = vmax.f32 %v1084_v57, 0.0  ;;  %v2394_v45 = vcombine.high %v1237_v42, %v1241_v43  ;;  %v1245_v46 = vld [vmem:[#allocation2 + $0x2c0] sm:$0xff]  ;;  %v2393_v48 = vcombine.low %v1237_v42, %v1241_v43  ;;  %v1179_v42 = vld [vmem:[#allocation2 + $0xb0] sm:$0xff]  ;;  %v1180_v43 = vld [vmem:[#allocation2 + $0xb8] sm:$0xff] }
 0x320   : > { %v1093_v0 = vmax.f32 %v1085_v58, 0.0  ;;  %v1249_v47 = vld [vmem:[#allocation2 + $0x2e0] sm:$0xff] }
 0x321   : > { %v1096_v1 = vpack.c.bf16 %v1092_v60, %v1090_v59  ;;  %v2402_v49 = vcombine.high %v1245_v46, %v1249_v47  ;;  %v1253_v50 = vld [vmem:[#allocation2 + $0x300] sm:$0xff]  ;;  %v2401_v52 = vcombine.low %v1245_v46, %v1249_v47  ;;  %v1183_v47 = vld [vmem:[#allocation2 + $0xd0] sm:$0xff] }
 0x322   : > { %v1097_v2 = vpack.c.bf16 %v1093_v0, %v1091_v63  ;;  %v1257_v51 = vld [vmem:[#allocation2 + $0x320] sm:$0xff]  ;;  %v1274_v0 = vld [vmem:[#allocation2 + $0x3a8] sm:$0xff] }
 0x323   : > { %v2410_v53 = vcombine.high %v1253_v50, %v1257_v51  ;;  %v1261_v55 = vld [vmem:[#allocation2 + $0x340] sm:$0xff]  ;;  %v2409_v57 = vcombine.low %v1253_v50, %v1257_v51  ;;  %v1188_v50 = vld [vmem:[#allocation2 + $0xf8] sm:$0xff]  ;;  %v2333_v51 = vcombine.low %v1175_v40, %v1179_v42 }
 0x324   : > { %1104 = vmatprep.subr.bf16.mxu1 %v1097_v2  ;;  %v1265_v56 = vld [vmem:[#allocation2 + $0x360] sm:$0xff]  ;;  %v2427_v2 = vcombine.low %v1270_v62, %v1274_v0 }
 0x325   : > { %1105 = vmatpush1.bf16.msra.mxu1 %v1096_v1  ;;  %v2418_v58 = vcombine.high %v1261_v55, %v1265_v56  ;;  %v2417_v59 = vcombine.low %v1261_v55, %v1265_v56  ;;  %v1269_v60 = vld [vmem:[#allocation2 + $0x380] sm:$0xff]  ;;  %v1191_v56 = vld [vmem:[#allocation2 + $0x110] sm:$0xff] }
 0x326   : > { %1925 = vmatprep.subr.bf16.mxu1 %v2314_v3  ;;  %v2426_v63 = vcombine.high %v1269_v60, %v1273_v61  ;;  %v2425_v1 = vcombine.low %v1269_v60, %v1273_v61  ;;  %v2428_v3 = vcombine.high %v1270_v62, %v1274_v0  ;;  %v1199_v0 = vld [vmem:[#allocation2 + $0x150] sm:$0xff] }
 0x328   : > { %2312 = vmatmul.mubr.msk.bf16.vlgmr.msra.gmra.mrb[16].mxu1 %vm962_vm5, %v1098_v6  ;;  %1994 = vmatprep.subr.bf16.mxu0 %v2428_v3  ;;  %v1278_v6 = vld [vmem:[#allocation2 + $0x3c8] sm:$0xff]  ;;  %v1204_v3 = vld [vmem:[#allocation2 + $0x178] sm:$0xff] }
 0x329   : > { %1926 = vmatpush1.bf16.msra.mxu1 %v2313_v9  ;;  %1995 = vmatpush1.bf16.msra.mxu0 %v2427_v2  ;;  %v2434_v9 = vcombine.high %v1277_v4, %v1281_v5  ;;  %v1200_v2 = vld [vmem:[#allocation2 + $0x158] sm:$0xff] }
 0x32a   : > { %1927 = vmatprep.subr.bf16.mxu1 %v2322_v10  ;;  %v1282_v10 = vld [vmem:[#allocation2 + $0x3e8] sm:$0xff] }
 0x32b   : > { %v2435_v12 = vcombine.low %v1278_v6, %v1282_v10 }
 0x32d   : > { %1928 = vmatpush1.bf16.msra.mxu1 %v2321_v13  ;;  %v2436_v13 = vcombine.high %v1278_v6, %v1282_v10  ;;  %v1207_v10 = vld [vmem:[#allocation2 + $0x190] sm:$0xff] }
 0x32e   : > { %1929 = vmatprep.subr.bf16.mxu1 %v2330_v14  ;;  %v1159_v14 = vld [vmem:[#allocation2 + $0x10] sm:$0xff] }
 0x32f   : > { %1996 = vmatprep.subr.bf16.mxu0 %v2436_v13  ;;  %v2317_v19 = vcombine.low %v1159_v14, %v1163_v15  ;;  %v1212_v13 = vld [vmem:[#allocation2 + $0x1b8] sm:$0xff] }
 0x330   : > { %1997 = vmatpush1.bf16.msra.mxu0 %v2435_v12  ;;  %v1208_v12 = vld [vmem:[#allocation2 + $0x198] sm:$0xff] }
 0x331   : > { %1930 = vmatpush1.bf16.msra.mxu1 %v2329_v17  ;;  %v2318_v17 = vcombine.high %v1159_v14, %v1163_v15  ;;  %v2359_v15 = vcombine.low %v1200_v2, %v1204_v3 }
 0x332   : > { %1931 = vmatprep.subr.bf16.mxu1 %v2338_v18  ;;  %v1164_v18 = vld [vmem:[#allocation2 + $0x38] sm:$0xff] }
 0x333   : > { %v2319_v20 = vcombine.low %v1160_v16, %v1164_v18 }
 0x335   : > { %1932 = vmatpush1.bf16.msra.mxu1 %v2337_v21  ;;  %v2320_v21 = vcombine.high %v1160_v16, %v1164_v18  ;;  %v1215_v18 = vld [vmem:[#allocation2 + $0x1d0] sm:$0xff] }
 0x336   : > { %1933 = vmatprep.subr.bf16.mxu1 %v2346_v22 }
 0x337   : > { %2048 = vmatprep.subr.bf16.mxu0 %v2320_v21  ;;  %v1220_v21 = vld [vmem:[#allocation2 + $0x1f8] sm:$0xff] }
 0x339   : > { %1934 = vmatpush1.bf16.msra.mxu1 %v2345_v25 }
 0x33a   : > { %1935 = vmatprep.subr.bf16.mxu1 %v2354_v26 }
 0x33d   : > { %1936 = vmatpush1.bf16.msra.mxu1 %v2353_v29 }
 0x33e   : > { %1937 = vmatprep.subr.bf16.mxu1 %v2362_v30 }
 0x341   : > { %1938 = vmatpush1.bf16.msra.mxu1 %v2361_v33  ;;  %v1167_v33 = vld [vmem:[#allocation2 + $0x50] sm:$0xff] }
 0x342   : > { %1939 = vmatprep.subr.bf16.mxu1 %v2370_v34 }
 0x345   : > { %1940 = vmatpush1.bf16.msra.mxu1 %v2369_v37  ;;  %v1172_v37 = vld [vmem:[#allocation2 + $0x78] sm:$0xff] }
 0x346   : > { %1941 = vmatprep.subr.bf16.mxu1 %v2378_v38 }
 0x349   : > { %1942 = vmatpush1.bf16.msra.mxu1 %v2377_v54  ;;  %v2326_v54 = vcombine.high %v1167_v33, %v1171_v35 }
 0x34a   : > { %1943 = vmatprep.subr.bf16.mxu1 %v2386_v41  ;;  %v2328_v41 = vcombine.high %v1168_v36, %v1172_v37 }
 0x34d   : > { %1944 = vmatpush1.bf16.msra.mxu1 %v2385_v44  ;;  %v2327_v44 = vcombine.low %v1168_v36, %v1172_v37  ;;  %v1232_v36 = vld [vmem:[#allocation2 + $0x258] sm:$0xff] }
 0x34e   : > { %1945 = vmatprep.subr.bf16.mxu1 %v2394_v45  ;;  %v2334_v45 = vcombine.high %v1175_v40, %v1179_v42  ;;  %v1236_v37 = vld [vmem:[#allocation2 + $0x278] sm:$0xff]  ;;  %v1239_v42 = vld [vmem:[#allocation2 + $0x290] sm:$0xff] }
 0x351   : > { %1946 = vmatpush1.bf16.msra.mxu1 %v2393_v48  ;;  %v1187_v48 = vld [vmem:[#allocation2 + $0xf0] sm:$0xff] }
 0x352   : > { %1947 = vmatprep.subr.bf16.mxu1 %v2402_v49  ;;  %v1184_v49 = vld [vmem:[#allocation2 + $0xd8] sm:$0xff]  ;;  %v2341_v60 = vcombine.low %v1183_v47, %v1187_v48 }
 0x353   : > { %v2344_v55 = vcombine.high %v1184_v49, %v1188_v50  ;;  %v2343_v61 = vcombine.low %v1184_v49, %v1188_v50  ;;  %v1251_v49 = vld [vmem:[#allocation2 + $0x2f0] sm:$0xff]  ;;  %v1248_v50 = vld [vmem:[#allocation2 + $0x2d8] sm:$0xff] }
 0x355   : > { %1948 = vmatpush1.bf16.msra.mxu1 %v2401_v52 }
 0x356   : > { %1949 = vmatprep.subr.bf16.mxu1 %v2410_v53  ;;  %v2342_v53 = vcombine.high %v1183_v47, %v1187_v48  ;;  %v1247_v48 = vld [vmem:[#allocation2 + $0x2d0] sm:$0xff] }
 0x359   : > { %1950 = vmatpush1.bf16.msra.mxu1 %v2409_v57  ;;  %v1195_v57 = vld [vmem:[#allocation2 + $0x130] sm:$0xff] }
 0x35a   : > { %1951 = vmatprep.subr.bf16.mxu1 %v2418_v58  ;;  %v1192_v58 = vld [vmem:[#allocation2 + $0x118] sm:$0xff]  ;;  %v2350_v62 = vcombine.high %v1191_v56, %v1195_v57  ;;  %v2349_v4 = vcombine.low %v1191_v56, %v1195_v57  ;;  %v1255_v57 = vld [vmem:[#allocation2 + $0x310] sm:$0xff] }
 0x35d   : > { %1952 = vmatpush1.bf16.msra.mxu1 %v2417_v59  ;;  %v1196_v59 = vld [vmem:[#allocation2 + $0x138] sm:$0xff] }
 0x35e   : > { %1953 = vmatprep.subr.bf16.mxu1 %v2426_v63  ;;  %v2352_v63 = vcombine.high %v1192_v58, %v1196_v59  ;;  %v2351_v5 = vcombine.low %v1192_v58, %v1196_v59  ;;  %v1259_v58 = vld [vmem:[#allocation2 + $0x330] sm:$0xff]  ;;  %v1256_v59 = vld [vmem:[#allocation2 + $0x318] sm:$0xff] }
 0x361   : > { %1954 = vmatpush1.bf16.msra.mxu1 %v2425_v1  ;;  %v1203_v1 = vld [vmem:[#allocation2 + $0x170] sm:$0xff] }
 0x362   : > { %1955 = vmatprep.subr.bf16.mxu1 %v2434_v9  ;;  %v2358_v6 = vcombine.high %v1199_v0, %v1203_v1  ;;  %v2360_v9 = vcombine.high %v1200_v2, %v1204_v3  ;;  %v2357_v14 = vcombine.low %v1199_v0, %v1203_v1  ;;  %v1263_v1 = vld [vmem:[#allocation2 + $0x350] sm:$0xff]  ;;  %v1264_v3 = vld [vmem:[#allocation2 + $0x358] sm:$0xff] }
 0x363   : > { %v1267_v2 = vld [vmem:[#allocation2 + $0x370] sm:$0xff] }
 0x365   : > { %1956 = vmatpush1.bf16.msra.mxu1 %v2433_v11  ;;  %v1211_v11 = vld [vmem:[#allocation2 + $0x1b0] sm:$0xff] }
 0x366   : > { %2007 = vmatprep.subr.bf16.mxu1 %v2318_v17  ;;  %v2366_v16 = vcombine.high %v1207_v10, %v1211_v11  ;;  %v2368_v17 = vcombine.high %v1208_v12, %v1212_v13 }
 0x3fb   : > { %v1136_v22 = vpop.f32.mrb[16].mxu1 }
 0x3fc   : > { %v1143_v23 = vmul.f32 %v1136_v22, %v2847_v7  ;;  %v1138_v24 = vpop.f32.mrb[17].mxu1 }
 0x3fd   : > { %v1144_v25 = vmul.f32 %v1138_v24, %v2849_v8  ;;  %v1140_v26 = vpop.f32.mrb[18].mxu1 }
 0x3fe   : > { %v1147_v27 = vrot.slane %v1143_v23, 5  ;;  %v1141_v28 = vpop.f32.mrb[19].mxu1  ;;  %v2367_v23 = vcombine.low %v1208_v12, %v1212_v13  ;;  %v1223_v26 = vld [vmem:[#allocation2 + $0x210] sm:$0xff]  ;;  %v1272_v13 = vld [vmem:[#allocation2 + $0x398] sm:$0xff] }
 0x3ff   : > { %v1148_v29 = vrot.slane %v1144_v25, 5  ;;  %v1224_v28 = vld [vmem:[#allocation2 + $0x218] sm:$0xff]  ;;  %v1275_v12 = vld [vmem:[#allocation2 + $0x3b0] sm:$0xff] }
 0x400   : > { %v1151_v30 = vsub.f32 %v2847_v7, %v1147_v27  ;;  %v1176_v7 = vld [vmem:[#allocation2 + $0x98] sm:$0xff]  ;;  %v1227_v27 = vld [vmem:[#allocation2 + $0x230] sm:$0xff] }
 0x401   : > { %v1152_v31 = vsub.f32 %v2849_v8, %v1148_v29  ;;  %v2325_v8 = vcombine.low %v1167_v33, %v1171_v35  ;;  %v2336_v46 = vcombine.high %v1176_v7, %v1180_v43  ;;  %v2335_v52 = vcombine.low %v1176_v7, %v1180_v43  ;;  %v1228_v29 = vld [vmem:[#allocation2 + $0x238] sm:$0xff]  ;;  %v1235_v35 = vld [vmem:[#allocation2 + $0x270] sm:$0xff] }
 0x402   : > { %v1153_v32 = vsel %vm495_vm0, %v1136_v22, %v1151_v30  ;;  %v2365_v22 = vcombine.low %v1207_v10, %v1211_v11  ;;  %v2384_v33 = vcombine.high %v1224_v28, %v1228_v29  ;;  %v2383_v40 = vcombine.low %v1224_v28, %v1228_v29  ;;  %v1243_v7 = vld [vmem:[#allocation2 + $0x2b0] sm:$0xff]  ;;  %v1240_v43 = vld [vmem:[#allocation2 + $0x298] sm:$0xff] }
 0x403   : > { %v1154_v34 = vsel %vm495_vm0, %v1138_v24, %v1152_v31  ;;  %v2893_v39 = vpack.c.bf16 %v1153_v32, %v1153_v32  ;;  %v2382_v32 = vcombine.high %v1223_v26, %v1227_v27  ;;  %v1271_v11 = vld [vmem:[#allocation2 + $0x390] sm:$0xff] }
 0x404   : > { %v1156_v38 = vpack.c.bf16 %v1154_v34, %v1154_v34  ;;  %v1231_v34 = vld [vmem:[#allocation2 + $0x250] sm:$0xff] }
 0x405   : > { %v2089_v29 = vld [vmem:[%s2903_s24] sm:$0x77] }
 0x406   : > { %1957 = vmatprep.mubr.bf16.mxu1 %v1156_v38  ;;  %1998 = vmatprep.mubr.bf16.mxu0 %v1156_v38 }
 0x407   : > { %1958 = vmatmul.mubr.bf16.vlgmr.msra.gmra.mrb[20].mxu1 %v2893_v39  ;;  %1999 = vmatmul.mubr.bf16.vlgmr.msra.gmra.mrb[4].mxu0 %v2893_v39 }
 0x408   : > { %2008 = vmatpush1.bf16.msra.mxu1 %v2317_v19  ;;  %2049 = vmatpush1.bf16.msra.mxu0 %v2319_v20  ;;  %v1219_v19 = vld [vmem:[#allocation2 + $0x1f0] sm:$0xff]  ;;  %v1216_v20 = vld [vmem:[#allocation2 + $0x1d8] sm:$0xff] }
 0x409   : > { %2039 = vmatprep.mubr.bf16.mxu1 %v1156_v38  ;;  %2080 = vmatprep.mubr.bf16.mxu0 %v1156_v38  ;;  %v2374_v24 = vcombine.high %v1215_v18, %v1219_v19  ;;  %v2376_v25 = vcombine.high %v1216_v20, %v1220_v21  ;;  %v2373_v30 = vcombine.low %v1215_v18, %v1219_v19  ;;  %v1279_v19 = vld [vmem:[#allocation2 + $0x3d0] sm:$0xff] }
 0x40a   : > { %2009 = vmatprep.subr.bf16.mxu1 %v2326_v54  ;;  %2050 = vmatprep.subr.bf16.mxu0 %v2328_v41  ;;  %v2375_v31 = vcombine.low %v1216_v20, %v1220_v21  ;;  %v2381_v38 = vcombine.low %v1223_v26, %v1227_v27  ;;  %v2390_v54 = vcombine.high %v1231_v34, %v1235_v35  ;;  %v1283_v20 = vld [vmem:[#allocation2 + $0x3f0] sm:$0xff]  ;;  %v1280_v21 = vld [vmem:[#allocation2 + $0x3d8] sm:$0xff] }
 0x40b   : > { %v2392_v41 = vcombine.high %v1232_v36, %v1236_v37  ;;  %v2437_v27 = vcombine.low %v1279_v19, %v1283_v20 }
 0x40c   : > { %2010 = vmatpush1.bf16.msra.mxu1 %v2325_v8  ;;  %2051 = vmatpush1.bf16.msra.mxu0 %v2327_v44  ;;  %v1244_v8 = vld [vmem:[#allocation2 + $0x2b8] sm:$0xff]  ;;  %v2389_v44 = vcombine.low %v1231_v34, %v1235_v35 }
 0x40d   : > { %2011 = vmatprep.subr.bf16.mxu1 %v2334_v45  ;;  %2052 = vmatprep.subr.bf16.mxu0 %v2336_v46  ;;  %v2391_v45 = vcombine.low %v1232_v36, %v1236_v37  ;;  %v2398_v46 = vcombine.high %v1239_v42, %v1243_v7  ;;  %v2400_v47 = vcombine.high %v1240_v43, %v1244_v8 }
 0x410   : > { %2012 = vmatpush1.bf16.msra.mxu1 %v2333_v51  ;;  %2053 = vmatpush1.bf16.msra.mxu0 %v2335_v52  ;;  %v1252_v51 = vld [vmem:[#allocation2 + $0x2f8] sm:$0xff]  ;;  %v2397_v52 = vcombine.low %v1239_v42, %v1243_v7 }
 0x411   : > { %2013 = vmatprep.subr.bf16.mxu1 %v2342_v53  ;;  %2054 = vmatprep.subr.bf16.mxu0 %v2344_v55  ;;  %v2399_v53 = vcombine.low %v1240_v43, %v1244_v8  ;;  %v2406_v55 = vcombine.high %v1247_v48, %v1251_v49  ;;  %v2408_v56 = vcombine.high %v1248_v50, %v1252_v51 }
 0x414   : > { %2014 = vmatpush1.bf16.msra.mxu1 %v2341_v60  ;;  %2055 = vmatpush1.bf16.msra.mxu0 %v2343_v61  ;;  %v1260_v60 = vld [vmem:[#allocation2 + $0x338] sm:$0xff]  ;;  %v2405_v61 = vcombine.low %v1247_v48, %v1251_v49 }
 0x415   : > { %2015 = vmatprep.subr.bf16.mxu1 %v2350_v62  ;;  %2056 = vmatprep.subr.bf16.mxu0 %v2352_v63  ;;  %v2407_v62 = vcombine.low %v1248_v50, %v1252_v51  ;;  %v2414_v63 = vcombine.high %v1255_v57, %v1259_v58  ;;  %v2416_v0 = vcombine.high %v1256_v59, %v1260_v60 }
 0x418   : > { %2016 = vmatpush1.bf16.msra.mxu1 %v2349_v4  ;;  %2057 = vmatpush1.bf16.msra.mxu0 %v2351_v5  ;;  %v1268_v4 = vld [vmem:[#allocation2 + $0x378] sm:$0xff]  ;;  %v2413_v5 = vcombine.low %v1255_v57, %v1259_v58 }
 0x419   : > { %2017 = vmatprep.subr.bf16.mxu1 %v2358_v6  ;;  %2058 = vmatprep.subr.bf16.mxu0 %v2360_v9  ;;  %v2415_v6 = vcombine.low %v1256_v59, %v1260_v60  ;;  %v2422_v9 = vcombine.high %v1263_v1, %v1267_v2  ;;  %v2424_v10 = vcombine.high %v1264_v3, %v1268_v4 }
 0x41c   : > { %2018 = vmatpush1.bf16.msra.mxu1 %v2357_v14  ;;  %2059 = vmatpush1.bf16.msra.mxu0 %v2359_v15  ;;  %v1276_v14 = vld [vmem:[#allocation2 + $0x3b8] sm:$0xff]  ;;  %v2421_v15 = vcombine.low %v1263_v1, %v1267_v2 }
 0x41d   : > { %2019 = vmatprep.subr.bf16.mxu1 %v2366_v16  ;;  %2060 = vmatprep.subr.bf16.mxu0 %v2368_v17  ;;  %v2423_v16 = vcombine.low %v1264_v3, %v1268_v4  ;;  %v2430_v17 = vcombine.high %v1271_v11, %v1275_v12  ;;  %v2432_v18 = vcombine.high %v1272_v13, %v1276_v14 }
 0x420   : > { %2020 = vmatpush1.bf16.msra.mxu1 %v2365_v22  ;;  %2061 = vmatpush1.bf16.msra.mxu0 %v2367_v23  ;;  %v1284_v22 = vld [vmem:[#allocation2 + $0x3f8] sm:$0xff]  ;;  %v2429_v23 = vcombine.low %v1271_v11, %v1275_v12 }
 0x421   : > { %2021 = vmatprep.subr.bf16.mxu1 %v2374_v24  ;;  %2062 = vmatprep.subr.bf16.mxu0 %v2376_v25  ;;  %v2431_v24 = vcombine.low %v1272_v13, %v1276_v14  ;;  %v2438_v25 = vcombine.high %v1279_v19, %v1283_v20  ;;  %v2440_v26 = vcombine.high %v1280_v21, %v1284_v22 }
 0x422   : > { %v2439_v28 = vcombine.low %v1280_v21, %v1284_v22 }
 0x424   : > { %2022 = vmatpush1.bf16.msra.mxu1 %v2373_v30  ;;  %2063 = vmatpush1.bf16.msra.mxu0 %v2375_v31  ;;  %v2090_v30 = vld [vmem:[%s2903_s24 + $0x8] sm:$0x77]  ;;  %v2097_v31 = vcombine.high %v2089_v29, %v2089_v29 }
 0x425   : > { %2023 = vmatprep.subr.bf16.mxu1 %v2382_v32  ;;  %2064 = vmatprep.subr.bf16.mxu0 %v2384_v33  ;;  %v2098_v32 = vcombine.high %v2090_v30, %v2090_v30 }
 0x428   : > { %2024 = vmatpush1.bf16.msra.mxu1 %v2381_v38  ;;  %2065 = vmatpush1.bf16.msra.mxu0 %v2383_v40 }
 0x429   : > { %2025 = vmatprep.subr.bf16.mxu1 %v2390_v54  ;;  %2066 = vmatprep.subr.bf16.mxu0 %v2392_v41 }
 0x42c   : > { %2026 = vmatpush1.bf16.msra.mxu1 %v2389_v44  ;;  %2067 = vmatpush1.bf16.msra.mxu0 %v2391_v45 }
 0x42d   : > { %2027 = vmatprep.subr.bf16.mxu1 %v2398_v46  ;;  %2068 = vmatprep.subr.bf16.mxu0 %v2400_v47 }
 0x430   : > { %2028 = vmatpush1.bf16.msra.mxu1 %v2397_v52  ;;  %2069 = vmatpush1.bf16.msra.mxu0 %v2399_v53  ;;  %v2091_v52 = vld [vmem:[%s2903_s24 + $0x10] sm:$0x77]  ;;  %v2092_v53 = vld [vmem:[%s2903_s24 + $0x18] sm:$0x77] }
 0x431   : > { %2029 = vmatprep.subr.bf16.mxu1 %v2406_v55  ;;  %2070 = vmatprep.subr.bf16.mxu0 %v2408_v56  ;;  %v2099_v55 = vcombine.high %v2091_v52, %v2091_v52  ;;  %v2100_v56 = vcombine.high %v2092_v53, %v2092_v53 }
 0x434   : > { %2030 = vmatpush1.bf16.msra.mxu1 %v2405_v61  ;;  %2071 = vmatpush1.bf16.msra.mxu0 %v2407_v62 }
 0x435   : > { %2031 = vmatprep.subr.bf16.mxu1 %v2414_v63  ;;  %2072 = vmatprep.subr.bf16.mxu0 %v2416_v0 }
 0x438   : > { %2032 = vmatpush1.bf16.msra.mxu1 %v2413_v5  ;;  %2073 = vmatpush1.bf16.msra.mxu0 %v2415_v6 }
 0x439   : > { %2033 = vmatprep.subr.bf16.mxu1 %v2422_v9  ;;  %2074 = vmatprep.subr.bf16.mxu0 %v2424_v10 }
 0x43c   : > { %2034 = vmatpush1.bf16.msra.mxu1 %v2421_v15  ;;  %2075 = vmatpush1.bf16.msra.mxu0 %v2423_v16 }
 0x43d   : > { %2035 = vmatprep.subr.bf16.mxu1 %v2430_v17  ;;  %2076 = vmatprep.subr.bf16.mxu0 %v2432_v18 }
 0x440   : > { %2036 = vmatpush1.bf16.msra.mxu1 %v2429_v23  ;;  %2077 = vmatpush1.bf16.msra.mxu0 %v2431_v24 }
 0x441   : > { %2037 = vmatprep.subr.bf16.mxu1 %v2438_v25  ;;  %2078 = vmatprep.subr.bf16.mxu0 %v2440_v26 }
 0x444   : > { %2038 = vmatpush1.bf16.msra.mxu1 %v2437_v27  ;;  %2079 = vmatpush1.bf16.msra.mxu0 %v2439_v28 }
 0x447   : > { %2040 = vmatmul.mubr.bf16.vlgmr.msra.gmra.mrb[24].mxu1 %v2893_v39  ;;  %2081 = vmatmul.mubr.bf16.vlgmr.msra.gmra.mrb[8].mxu0 %v2893_v39 }
 0x4da   : > { %v1959_v33 = vpop.f32.mrb[20].mxu1  ;;  %v2000_v34 = vpop.f32.mrb[4].mxu0 }
 0x4db   : > { %v2105_v35 = vmul.f32 %v2089_v29, %v1959_v33  ;;  %v2121_v36 = vrot.slane %v1959_v33, 3  ;;  %v2107_v37 = vmul.f32 %v2090_v30, %v2000_v34  ;;  %v2123_v38 = vrot.slane %v2000_v34, 3  ;;  %v1961_v40 = vpop.f32.mrb[21].mxu1  ;;  %v2002_v39 = vpop.f32.mrb[5].mxu0 }
 0x4dc   : > { %v2106_v54 = vmul.f32 %v2097_v31, %v1961_v40  ;;  %v2122_v41 = vrot.slane %v1961_v40, 3  ;;  %v2108_v42 = vmul.f32 %v2098_v32, %v2002_v39  ;;  %v2124_v7 = vrot.slane %v2002_v39, 3  ;;  %v1963_v43 = vpop.f32.mrb[22].mxu1  ;;  %v2004_v8 = vpop.f32.mrb[6].mxu0 }
 0x4dd   : > { %v2137_v44 = vadd.f32 %v2121_v36, %v2105_v35  ;;  %v2139_v45 = vadd.f32 %v2123_v38, %v2107_v37  ;;  %v1964_v46 = vpop.f32.mrb[23].mxu1  ;;  %v2005_v47 = vpop.f32.mrb[7].mxu0 }
 0x4de   : > { %v2138_v48 = vadd.f32 %v2122_v41, %v2106_v54  ;;  %v2140_v49 = vadd.f32 %v2124_v7, %v2108_v42 }
 0x4e0   : > { %v2153_v50 = vcombine.low %v2137_v44, %v2138_v48  ;;  %v2154_v51 = vcombine.low %v2139_v45, %v2140_v49 }
 0x4e2   : > { %2161 = vst [vmem:[%s2910_s29] sm:$0x77] %v2153_v50  ;;  %2162 = vst [vmem:[%s2910_s29 + $0x8] sm:$0x77] %v2154_v51 }
 0x51a   : > { %v2041_v57 = vpop.f32.mrb[24].mxu1  ;;  %v2082_v58 = vpop.f32.mrb[8].mxu0 }
 0x51b   : > { %v2109_v59 = vmul.f32 %v2091_v52, %v2041_v57  ;;  %v2125_v60 = vrot.slane %v2041_v57, 3  ;;  %v2111_v61 = vmul.f32 %v2092_v53, %v2082_v58  ;;  %v2127_v62 = vrot.slane %v2082_v58, 3  ;;  %v2043_v63 = vpop.f32.mrb[25].mxu1  ;;  %v2084_v0 = vpop.f32.mrb[9].mxu0 }
 0x51c   : > { %v2110_v1 = vmul.f32 %v2099_v55, %v2043_v63  ;;  %v2126_v2 = vrot.slane %v2043_v63, 3  ;;  %v2112_v3 = vmul.f32 %v2100_v56, %v2084_v0  ;;  %v2128_v4 = vrot.slane %v2084_v0, 3  ;;  %v2045_v5 = vpop.f32.mrb[26].mxu1  ;;  %v2086_v6 = vpop.f32.mrb[10].mxu0 }
 0x51d   : > { %v2141_v9 = vadd.f32 %v2125_v60, %v2109_v59  ;;  %v2143_v10 = vadd.f32 %v2127_v62, %v2111_v61  ;;  %v2046_v11 = vpop.f32.mrb[27].mxu1  ;;  %v2087_v12 = vpop.f32.mrb[11].mxu0 }
 0x51e   : > { %v2142_v13 = vadd.f32 %v2126_v2, %v2110_v1  ;;  %v2144_v14 = vadd.f32 %v2128_v4, %v2112_v3 }
 0x520   : > { %v2155_v15 = vcombine.low %v2141_v9, %v2142_v13  ;;  %v2156_v16 = vcombine.low %v2143_v10, %v2144_v14 }
 0x522   : > { %2163 = vst [vmem:[%s2910_s29 + $0x10] sm:$0x77] %v2155_v15  ;;  %2164 = vst [vmem:[%s2910_s29 + $0x18] sm:$0x77] %v2156_v16 }
 0x523 PF: > { %s23_s21 = sadd.s32 1, %s2567_s21  }
 0x524   : > { %p20_p3 = scmp.ge.s32.totalorder %s23_s21, 4  }
 0x526   :  { %22 = sbr.rel (!%p20_p3) target bundleno = 1 (0x1), region = 109 }
 0x52d   :  { %2186 = vsyncpa [#allocation3], 1 }
 0x52e   :  { %2188 = vsyncpa [#allocation3 + $0x1], 1 }

</bundles_post_ra>
